<compile_context>
chip_gen: v6e
topology: v6e:2x2x1
jax: 0.10.0
libtpu: 0.0.40
codegen_flags: <defaults>
</compile_context>

<pallas_src>
import functools
import math

import jax
import jax.numpy as jnp
from jax.experimental import pallas as pl
from jax.experimental.pallas import tpu as pltpu

# ----------------------------- configuration --------------------------------
B = 2            # batch
N = 8            # items per set
F_IN = 64        # input feature dim (visual_feature = Identity)
EMBD_DIM = 128   # param.embd_dim
NUM_HEADS = 4    # param.num_heads
NUM_SAB = 2      # param.num_sab
NUM_SEEDS = 1    # param.num_seeds  (=> self.sab is Identity)
NUM_USERS = 16   # param.num_users (small synthetic)
NUM_PROTO = 16   # param.num_proto
NEG_BIAS = -1e30


def _layernorm(x, gamma, beta, eps=1e-5):
    mu = jnp.mean(x, axis=-1, keepdims=True)
    var = jnp.mean(jnp.square(x - mu), axis=-1, keepdims=True)
    return (x - mu) * jax.lax.rsqrt(var + eps) * gamma + beta


def _mab_block(q_in, kv_in, bias, wqkv, wo, vec, *, num_heads, self_attn):
    """Multi-head MAB (Set Transformer) on flat [rows, D] activations.

    vec rows: 0=bq 1=bk 2=bv 3=bo 4=g0 5=be0 6=g1 7=be1
    bias: [H*n_q, H*n_k] additive attention bias (0 = attend, -1e30 = masked),
          built in the wrapper; encodes head block-diagonality, batch separation
          and item validity.  Heads are stacked along rows -> ONE softmax.
    """
    f32, bf16 = jnp.float32, jnp.bfloat16
    d = wo.shape[0]
    ds = d // num_heads
    nq = q_in.shape[0]
    scale = 1.0 / math.sqrt(ds)          # reference divides by sqrt(dim_split)

    # fused QKV projection (bf16 operands, f32 accumulation)
    pq = jnp.dot(q_in.astype(bf16), wqkv, preferred_element_type=f32)
    pk = pq if self_attn else jnp.dot(kv_in.astype(bf16), wqkv,
                                      preferred_element_type=f32)
    Qp = pq[:, 0:d] + vec[0:1, :]
    Kp = pk[:, d:2 * d] + vec[1:2, :]
    Vp = pk[:, 2 * d:3 * d] + vec[2:3, :]

    # Heads stacked along rows (same layout as the PyTorch torch.cat(split, 0)).
    Q_ = jnp.concatenate([Qp[:, h * ds:(h + 1) * ds] for h in range(num_heads)], axis=0)
    K_ = jnp.concatenate([Kp[:, h * ds:(h + 1) * ds] for h in range(num_heads)], axis=0)
    V_ = jnp.concatenate([Vp[:, h * ds:(h + 1) * ds] for h in range(num_heads)], axis=0)

    # One block-diagonal attention for all heads: single masked softmax.
    dots = jax.lax.dot_general(Q_.astype(bf16), K_.astype(bf16),
                               (((1,), (1,)), ((), ())),
                               preferred_element_type=f32) * scale
    dots = dots + bias
    dots = dots - jnp.max(dots, axis=-1, keepdims=True)
    e = jnp.exp(dots)
    inv = pl.reciprocal(jnp.sum(e, axis=-1, keepdims=True), approx=True)
    attn = e * inv
    o_ = Q_ + jnp.dot(attn.astype(bf16), V_.astype(bf16),
                      preferred_element_type=f32)                 # [H*nq, ds]

    # Re-assemble heads along lanes -> [nq, D]
    hcat = jnp.concatenate([o_[h * nq:(h + 1) * nq, :] for h in range(num_heads)],
                           axis=-1)

    hcat = _layernorm(hcat, vec[4:5, :], vec[5:6, :])
    hcat = hcat + jnp.maximum(
        jnp.dot(hcat.astype(bf16), wo, preferred_element_type=f32) + vec[3:4, :], 0.0)
    return _layernorm(hcat, vec[6:7, :], vec[7:8, :])


# ------------------------- fully fused forward kernel -------------------------
def _lpae_fused_kernel(feat_ref, bias_ref, ew_ref, wqkv_ref, wo_ref, vec_ref,
                       out_ref, *, num_heads, batch, num_rows):
    f32, bf16 = jnp.float32, jnp.bfloat16

    vec = vec_ref[...]          # [32+B, D] packed vectors (see wrapper layout)
    bias = bias_ref[...]        # [H*M + H*B, H*M] packed additive attn biases

    # ---- embed: Linear + LayerNorm + ReLU (Dropout = identity in eval) ----
    h = (jnp.dot(feat_ref[...].astype(bf16), ew_ref[...],
                 preferred_element_type=f32) + vec[0:1, :])
    h = jnp.maximum(_layernorm(h, vec[1:2, :], vec[2:3, :]), 0.0)       # [M, D]

    hm_rows = num_heads * num_rows
    sab_bias = bias[0:hm_rows, :]
    pma_bias = bias[hm_rows:hm_rows + num_heads * batch, :]

    # ---- 2x SAB (self attention over each set) ----
    h = _mab_block(h, h, sab_bias, wqkv_ref[0], wo_ref[0], vec[8:16],
                   num_heads=num_heads, self_attn=True)
    h = _mab_block(h, h, sab_bias, wqkv_ref[1], wo_ref[1], vec[16:24],
                   num_heads=num_heads, self_attn=True)

    # ---- PMA (num_seeds = 1): one learned seed query per batch element ----
    d = h.shape[-1]
    seeds = jnp.broadcast_to(vec[3:4, :], (batch, d))                   # [B, D]
    z = _mab_block(seeds, h, pma_bias, wqkv_ref[2], wo_ref[2], vec[24:32],
                   num_heads=num_heads, self_attn=False)                # [B, D]
    # self.sab = Identity; permute(1,0,2).reshape(-1,D) == identity for num_seeds=1.

    # ---- UserMemory scoring: cos-sim(trans(z), unit prototypes).sum ----
    t = jnp.dot(z.astype(bf16), wo_ref[3], preferred_element_type=f32) + vec[4:5, :]
    zn = t * jax.lax.rsqrt(jnp.maximum(jnp.sum(t * t, axis=-1, keepdims=True), 1e-24))
    score = jnp.sum(zn * vec[32:32 + batch, :], axis=-1, keepdims=True)  # [B, 1]
    out_ref[...] = jnp.broadcast_to(score, out_ref.shape)                # lane-dense


# ------------------------------ forward glue ----------------------------------
def lpae_net_forward(params, data, uidx, cate):
    """LPAENet.test_batch (eval forward). data:[B,N,F] uidx:[B] cate:[B,N] -> [B,1]"""
    b, n, f = data.shape
    m = b * n
    d = EMBD_DIM
    H = NUM_HEADS
    f32, bf16 = jnp.float32, jnp.bfloat16

    # visual_feature = Identity (use_nn_feature=True)
    feat = data.reshape(m, f).astype(f32)

    # ---- attention biases (additive; head block-diagonal; built once) ----
    valid = (cate.reshape(m) != -1).astype(f32)                          # [M]
    bid = jnp.repeat(jnp.arange(b, dtype=jnp.int32), n)                  # batch of row
    same = (bid[:, None] == bid[None, :]).astype(f32)
    sab_mask = same * (valid[:, None] * valid[None, :])                  # [M, M]
    pma_mask = ((jnp.arange(b, dtype=jnp.int32)[:, None] == bid[None, :])
                .astype(f32) * valid[None, :])                           # [B, M]
    eyeH = jnp.eye(H, dtype=f32)
    sab_full = (eyeH[:, None, :, None] * sab_mask[None, :, None, :]).reshape(H * m, H * m)
    pma_full = (eyeH[:, None, :, None] * pma_mask[None, :, None, :]).reshape(H * b, H * m)
    bias_all = jnp.concatenate([1.0 - sab_full, 1.0 - pma_full], axis=0) * NEG_BIAS

    # ---- out_proto[uidx] gather + normalize + per-batch sum (fused by XLA) ----
    anchors = params["memory"]["out_proto"][uidx]                        # [B, P, D]
    an = anchors * jax.lax.rsqrt(
        jnp.maximum(jnp.sum(anchors * anchors, axis=-1, keepdims=True), 1e-24))
    asum = jnp.sum(an, axis=1)                                           # [B, D]

    # ---- packed weights (bf16) and vectors (f32) ----
    ew = params["embed"]["w"].astype(bf16)                               # [F, D]
    wqkv_all = jnp.stack([params["sabs"][0]["wqkv"], params["sabs"][1]["wqkv"],
                          params["pma_mab"]["wqkv"]], axis=0).astype(bf16)   # [3,D,3D]
    wo_all = jnp.stack([params["sabs"][0]["wo"], params["sabs"][1]["wo"],
                        params["pma_mab"]["wo"], params["memory"]["w"]],
                       axis=0).astype(bf16)                              # [4, D, D]
    # vec slab rows: 0=emb_b 1=emb_gamma 2=emb_beta 3=pma_S 4=mem_b 5-7=pad
    #                8-15=sab0 vec, 16-23=sab1 vec, 24-31=pma vec, 32..=asum
    head_rows = jnp.concatenate(
        [params["embed"]["b"], params["embed"]["gamma"], params["embed"]["beta"],
         params["pma_S"], params["memory"]["b"], jnp.zeros((3, d), f32)], axis=0)
    vec_all = jnp.concatenate(
        [head_rows, params["sabs"][0]["vec"], params["sabs"][1]["vec"],
         params["pma_mab"]["vec"], asum], axis=0)                        # [32+B, D]

    kernel = functools.partial(_lpae_fused_kernel, num_heads=H, batch=b, num_rows=m)

    def full(shape):
        return pl.BlockSpec(shape, lambda i, _nd=len(shape): (0,) * _nd)

    out = pl.pallas_call(
        kernel,
        out_shape=jax.ShapeDtypeStruct((b, 128), f32),
        grid_spec=pltpu.PrefetchScalarGridSpec(
            num_scalar_prefetch=0, grid=(1,),
            in_specs=[full((m, f)),
                      full((H * m + H * b, H * m)),
                      full((f, d)),
                      full((3, d, 3 * d)),
                      full((4, d, d)),
                      full((32 + b, d))],
            out_specs=full((b, 128))),
        compiler_params=pltpu.CompilerParams(
            dimension_semantics=("arbitrary",)),
    )(feat, bias_all, ew, wqkv_all, wo_all, vec_all)
    return out[:, :1]                                                    # score.view(-1,1)


# ------------------------------ parameter init --------------------------------
def _kaiming_uniform(key, fan_in, shape):
    bound = math.sqrt(6.0 / fan_in)
    return jax.random.uniform(key, shape, jnp.float32, -bound, bound)


def _mab_params(key, d):
    ks = jax.random.split(key, 4)
    wq = _kaiming_uniform(ks[0], d, (d, d))
    wk = _kaiming_uniform(ks[1], d, (d, d))
    wv = _kaiming_uniform(ks[2], d, (d, d))
    wo = _kaiming_uniform(ks[3], d, (d, d))
    wqkv = jnp.concatenate([wq, wk, wv], axis=1)             # [d, 3d]
    # packed vectors: 0=bq 1=bk 2=bv 3=bo 4=g0 5=be0 6=g1 7=be1
    vec = jnp.zeros((8, d), jnp.float32).at[4].set(1.0).at[6].set(1.0)
    return dict(wqkv=wqkv, wo=wo, vec=vec)


def init_params(key):
    ks = jax.random.split(key, 8)
    embed = dict(w=_kaiming_uniform(ks[0], F_IN, (F_IN, EMBD_DIM)),
                 b=jnp.zeros((1, EMBD_DIM), jnp.float32),
                 gamma=jnp.ones((1, EMBD_DIM), jnp.float32),
                 beta=jnp.zeros((1, EMBD_DIM), jnp.float32))

    sabs = [_mab_params(ks[1 + i], EMBD_DIM) for i in range(NUM_SAB)]

    xav = math.sqrt(6.0 / (NUM_SEEDS + EMBD_DIM))
    pma_S = jax.random.uniform(ks[3], (NUM_SEEDS, EMBD_DIM), jnp.float32, -xav, xav)
    pma_mab = _mab_params(ks[4], EMBD_DIM)

    scale = math.sqrt(3.0 / EMBD_DIM)
    out_proto = jax.random.uniform(ks[5], (NUM_USERS, NUM_PROTO, EMBD_DIM),
                                   jnp.float32, -scale, scale)
    mw = math.sqrt(2.0 / EMBD_DIM) * jax.random.normal(ks[6], (EMBD_DIM, EMBD_DIM),
                                                       jnp.float32)
    mb = jnp.zeros((1, EMBD_DIM), jnp.float32)
    memory = dict(out_proto=out_proto, w=mw, b=mb)
    return dict(embed=embed, sabs=sabs, pma_S=pma_S, pma_mab=pma_mab, memory=memory)


# ----------------------------------- main --------------------------------------
if __name__ == "__main__":
    key = jax.random.PRNGKey(0)
    kd, kp = jax.random.split(key)
    params = init_params(kp)

    data = jax.random.normal(kd, (B, N, F_IN), jnp.float32)           # Identity-backbone feats
    cate = jnp.array([[0, 1, 2, 3, 4, 5, -1, -1],
                      [1, 2, 3, 4, 5, 6, 7, -1]], dtype=jnp.int32)    # -1 => masked item
    uidx = jnp.array([3, 7], dtype=jnp.int32)

    scores = jax.jit(lpae_net_forward)(params, data, uidx, cate)
    scores = jax.block_until_ready(scores)
    assert scores.shape == (B, 1) and scores.dtype == jnp.float32
    print("KERNEL_OK")
</pallas_src>

<mosaic_0001>
module attributes {stable_mosaic.version = 11 : i64} {
  func.func @_lpae_fused_kernel(%arg0: i32, %arg1: memref<16x64xf32, #tpu.memory_space<vmem>>, %arg2: memref<72x64xf32, #tpu.memory_space<vmem>>, %arg3: memref<64x128xbf16, #tpu.memory_space<vmem>>, %arg4: memref<3x128x384xbf16, #tpu.memory_space<vmem>>, %arg5: memref<4x128x128xbf16, #tpu.memory_space<vmem>>, %arg6: memref<34x128xf32, #tpu.memory_space<vmem>>, %arg7: memref<2x128xf32, #tpu.memory_space<vmem>>) attributes {dimension_semantics = [#tpu.dimension_semantics<arbitrary>], iteration_bounds = array<i64: 1>, scalar_prefetch = 0 : i64, scratch_operands = 0 : i64, tpu.core_type = #tpu.core_type<tc>, window_params = [{pipeline_mode = #tpu.pipeline_mode<synchronous>, transform_indices = @transform_0, window_bounds = array<i64: 16, 64>}, {pipeline_mode = #tpu.pipeline_mode<synchronous>, transform_indices = @transform_1, window_bounds = array<i64: 72, 64>}, {pipeline_mode = #tpu.pipeline_mode<synchronous>, transform_indices = @transform_2, window_bounds = array<i64: 64, 128>}, {pipeline_mode = #tpu.pipeline_mode<synchronous>, transform_indices = @transform_3, window_bounds = array<i64: 3, 128, 384>}, {pipeline_mode = #tpu.pipeline_mode<synchronous>, transform_indices = @transform_4, window_bounds = array<i64: 4, 128, 128>}, {pipeline_mode = #tpu.pipeline_mode<synchronous>, transform_indices = @transform_5, window_bounds = array<i64: 34, 128>}, {pipeline_mode = #tpu.pipeline_mode<synchronous>, transform_indices = @transform_6, window_bounds = array<i64: 2, 128>}]} {
    %c0 = arith.constant 0 : index
    %c0_0 = arith.constant 0 : index
    %0 = vector.load %arg6[%c0, %c0_0] : memref<34x128xf32, #tpu.memory_space<vmem>>, vector<34x128xf32>
    %c0_1 = arith.constant 0 : index
    %c0_2 = arith.constant 0 : index
    %1 = vector.load %arg2[%c0_1, %c0_2] : memref<72x64xf32, #tpu.memory_space<vmem>>, vector<72x64xf32>
    %c0_3 = arith.constant 0 : index
    %c0_4 = arith.constant 0 : index
    %2 = vector.load %arg1[%c0_3, %c0_4] : memref<16x64xf32, #tpu.memory_space<vmem>>, vector<16x64xf32>
    %3 = arith.truncf %2 : vector<16x64xf32> to vector<16x64xbf16>
    %c0_5 = arith.constant 0 : index
    %c0_6 = arith.constant 0 : index
    %4 = vector.load %arg3[%c0_5, %c0_6] : memref<64x128xbf16, #tpu.memory_space<vmem>>, vector<64x128xbf16>
    %cst = arith.constant dense<0.000000e+00> : vector<16x128xf32>
    %5 = tpu.matmul %3, %4, %cst {dimension_numbers = #tpu.dot_dimension_numbers<[1], [0], [0], [1], [0, 0, 1, 1], [], []>} : vector<16x64xbf16>, vector<64x128xbf16>, vector<16x128xf32> -> vector<16x128xf32>
    %6 = vector.extract_strided_slice %0 {offsets = [0, 0], sizes = [1, 128], strides = [1, 1]} : vector<34x128xf32> to vector<1x128xf32>
    %7 = vector.broadcast %6 : vector<1x128xf32> to vector<16x128xf32>
    %8 = arith.addf %5, %7 : vector<16x128xf32>
    %9 = vector.extract_strided_slice %0 {offsets = [1, 0], sizes = [1, 128], strides = [1, 1]} : vector<34x128xf32> to vector<1x128xf32>
    %10 = vector.extract_strided_slice %0 {offsets = [2, 0], sizes = [1, 128], strides = [1, 1]} : vector<34x128xf32> to vector<1x128xf32>
    %cst_7 = arith.constant dense<0.000000e+00> : vector<16xf32>
    %11 = vector.multi_reduction <add>, %8, %cst_7 [1] : vector<16x128xf32> to vector<16xf32>
    %12 = vector.shape_cast %11 : vector<16xf32> to vector<16x1xf32>
    %cst_8 = arith.constant 1.280000e+02 : f32
    %13 = vector.broadcast %cst_8 : f32 to vector<16x1xf32>
    %14 = arith.divf %12, %13 : vector<16x1xf32>
    %15 = vector.broadcast %14 : vector<16x1xf32> to vector<16x128xf32>
    %16 = arith.subf %8, %15 : vector<16x128xf32>
    %17 = arith.mulf %16, %16 : vector<16x128xf32>
    %cst_9 = arith.constant dense<0.000000e+00> : vector<16xf32>
    %18 = vector.multi_reduction <add>, %17, %cst_9 [1] : vector<16x128xf32> to vector<16xf32>
    %19 = vector.shape_cast %18 : vector<16xf32> to vector<16x1xf32>
    %cst_10 = arith.constant 1.280000e+02 : f32
    %20 = vector.broadcast %cst_10 : f32 to vector<16x1xf32>
    %21 = arith.divf %19, %20 : vector<16x1xf32>
    %22 = vector.broadcast %14 : vector<16x1xf32> to vector<16x128xf32>
    %23 = arith.subf %8, %22 : vector<16x128xf32>
    %cst_11 = arith.constant 9.99999974E-6 : f32
    %24 = vector.broadcast %cst_11 : f32 to vector<16x1xf32>
    %25 = arith.addf %21, %24 : vector<16x1xf32>
    %26 = math.rsqrt %25 : vector<16x1xf32>
    %27 = vector.broadcast %26 : vector<16x1xf32> to vector<16x128xf32>
    %28 = arith.mulf %23, %27 : vector<16x128xf32>
    %29 = vector.broadcast %9 : vector<1x128xf32> to vector<16x128xf32>
    %30 = arith.mulf %28, %29 : vector<16x128xf32>
    %31 = vector.broadcast %10 : vector<1x128xf32> to vector<16x128xf32>
    %32 = arith.addf %30, %31 : vector<16x128xf32>
    %cst_12 = arith.constant 0.000000e+00 : f32
    %33 = vector.broadcast %cst_12 : f32 to vector<16x128xf32>
    %34 = arith.maximumf %32, %33 : vector<16x128xf32>
    %35 = vector.extract_strided_slice %1 {offsets = [0, 0], sizes = [64, 64], strides = [1, 1]} : vector<72x64xf32> to vector<64x64xf32>
    %36 = vector.extract_strided_slice %1 {offsets = [64, 0], sizes = [8, 64], strides = [1, 1]} : vector<72x64xf32> to vector<8x64xf32>
    %c0_13 = arith.constant 0 : index
    %c0_14 = arith.constant 0 : index
    %c0_15 = arith.constant 0 : index
    %37 = vector.load %arg4[%c0_13, %c0_14, %c0_15] : memref<3x128x384xbf16, #tpu.memory_space<vmem>>, vector<1x128x384xbf16>
    %38 = vector.shape_cast %37 : vector<1x128x384xbf16> to vector<128x384xbf16>
    %c0_16 = arith.constant 0 : index
    %c0_17 = arith.constant 0 : index
    %c0_18 = arith.constant 0 : index
    %39 = vector.load %arg5[%c0_16, %c0_17, %c0_18] : memref<4x128x128xbf16, #tpu.memory_space<vmem>>, vector<1x128x128xbf16>
    %40 = vector.shape_cast %39 : vector<1x128x128xbf16> to vector<128x128xbf16>
    %41 = vector.extract_strided_slice %0 {offsets = [8, 0], sizes = [8, 128], strides = [1, 1]} : vector<34x128xf32> to vector<8x128xf32>
    %42 = arith.truncf %34 : vector<16x128xf32> to vector<16x128xbf16>
    %cst_19 = arith.constant dense<0.000000e+00> : vector<16x384xf32>
    %43 = tpu.matmul %42, %38, %cst_19 {dimension_numbers = #tpu.dot_dimension_numbers<[1], [0], [0], [1], [0, 0, 1, 1], [], []>} : vector<16x128xbf16>, vector<128x384xbf16>, vector<16x384xf32> -> vector<16x384xf32>
    %44 = vector.extract_strided_slice %43 {offsets = [0, 0], sizes = [16, 128], strides = [1, 1]} : vector<16x384xf32> to vector<16x128xf32>
    %45 = vector.extract_strided_slice %41 {offsets = [0, 0], sizes = [1, 128], strides = [1, 1]} : vector<8x128xf32> to vector<1x128xf32>
    %46 = vector.broadcast %45 : vector<1x128xf32> to vector<16x128xf32>
    %47 = arith.addf %44, %46 : vector<16x128xf32>
    %48 = vector.extract_strided_slice %43 {offsets = [0, 128], sizes = [16, 128], strides = [1, 1]} : vector<16x384xf32> to vector<16x128xf32>
    %49 = vector.extract_strided_slice %41 {offsets = [1, 0], sizes = [1, 128], strides = [1, 1]} : vector<8x128xf32> to vector<1x128xf32>
    %50 = vector.broadcast %49 : vector<1x128xf32> to vector<16x128xf32>
    %51 = arith.addf %48, %50 : vector<16x128xf32>
    %52 = vector.extract_strided_slice %43 {offsets = [0, 256], sizes = [16, 128], strides = [1, 1]} : vector<16x384xf32> to vector<16x128xf32>
    %53 = vector.extract_strided_slice %41 {offsets = [2, 0], sizes = [1, 128], strides = [1, 1]} : vector<8x128xf32> to vector<1x128xf32>
    %54 = vector.broadcast %53 : vector<1x128xf32> to vector<16x128xf32>
    %55 = arith.addf %52, %54 : vector<16x128xf32>
    %56 = vector.extract_strided_slice %47 {offsets = [0, 0], sizes = [16, 32], strides = [1, 1]} : vector<16x128xf32> to vector<16x32xf32>
    %57 = vector.extract_strided_slice %47 {offsets = [0, 32], sizes = [16, 32], strides = [1, 1]} : vector<16x128xf32> to vector<16x32xf32>
    %58 = vector.extract_strided_slice %47 {offsets = [0, 64], sizes = [16, 32], strides = [1, 1]} : vector<16x128xf32> to vector<16x32xf32>
    %59 = vector.extract_strided_slice %47 {offsets = [0, 96], sizes = [16, 32], strides = [1, 1]} : vector<16x128xf32> to vector<16x32xf32>
    %60 = tpu.concatenate %56, %57, %58, %59 in 0 : vector<16x32xf32>, vector<16x32xf32>, vector<16x32xf32>, vector<16x32xf32> -> vector<64x32xf32>
    %61 = vector.extract_strided_slice %51 {offsets = [0, 0], sizes = [16, 32], strides = [1, 1]} : vector<16x128xf32> to vector<16x32xf32>
    %62 = vector.extract_strided_slice %51 {offsets = [0, 32], sizes = [16, 32], strides = [1, 1]} : vector<16x128xf32> to vector<16x32xf32>
    %63 = vector.extract_strided_slice %51 {offsets = [0, 64], sizes = [16, 32], strides = [1, 1]} : vector<16x128xf32> to vector<16x32xf32>
    %64 = vector.extract_strided_slice %51 {offsets = [0, 96], sizes = [16, 32], strides = [1, 1]} : vector<16x128xf32> to vector<16x32xf32>
    %65 = tpu.concatenate %61, %62, %63, %64 in 0 : vector<16x32xf32>, vector<16x32xf32>, vector<16x32xf32>, vector<16x32xf32> -> vector<64x32xf32>
    %66 = vector.extract_strided_slice %55 {offsets = [0, 0], sizes = [16, 32], strides = [1, 1]} : vector<16x128xf32> to vector<16x32xf32>
    %67 = vector.extract_strided_slice %55 {offsets = [0, 32], sizes = [16, 32], strides = [1, 1]} : vector<16x128xf32> to vector<16x32xf32>
    %68 = vector.extract_strided_slice %55 {offsets = [0, 64], sizes = [16, 32], strides = [1, 1]} : vector<16x128xf32> to vector<16x32xf32>
    %69 = vector.extract_strided_slice %55 {offsets = [0, 96], sizes = [16, 32], strides = [1, 1]} : vector<16x128xf32> to vector<16x32xf32>
    %70 = tpu.concatenate %66, %67, %68, %69 in 0 : vector<16x32xf32>, vector<16x32xf32>, vector<16x32xf32>, vector<16x32xf32> -> vector<64x32xf32>
    %71 = arith.truncf %60 : vector<64x32xf32> to vector<64x32xbf16>
    %72 = arith.truncf %65 : vector<64x32xf32> to vector<64x32xbf16>
    %cst_20 = arith.constant dense<0.000000e+00> : vector<64x64xf32>
    %73 = tpu.matmul %71, %72, %cst_20 {dimension_numbers = #tpu.dot_dimension_numbers<[1], [1], [0], [0], [0, 0, 1, 0], [], []>} : vector<64x32xbf16>, vector<64x32xbf16>, vector<64x64xf32> -> vector<64x64xf32>
    %cst_21 = arith.constant 0.176776692 : f32
    %74 = vector.broadcast %cst_21 : f32 to vector<64x64xf32>
    %75 = arith.mulf %73, %74 : vector<64x64xf32>
    %76 = arith.addf %75, %35 : vector<64x64xf32>
    %cst_22 = arith.constant dense<0xFF800000> : vector<64xf32>
    %77 = vector.multi_reduction <maximumf>, %76, %cst_22 [1] : vector<64x64xf32> to vector<64xf32>
    %78 = vector.shape_cast %77 : vector<64xf32> to vector<64x1xf32>
    %79 = vector.broadcast %78 : vector<64x1xf32> to vector<64x64xf32>
    %80 = arith.subf %76, %79 : vector<64x64xf32>
    %81 = math.exp %80 : vector<64x64xf32>
    %cst_23 = arith.constant dense<0.000000e+00> : vector<64xf32>
    %82 = vector.multi_reduction <add>, %81, %cst_23 [1] : vector<64x64xf32> to vector<64xf32>
    %83 = vector.shape_cast %82 : vector<64xf32> to vector<64x1xf32>
    %84 = tpu.reciprocal %83 {approx = true} : vector<64x1xf32> -> vector<64x1xf32>
    %85 = vector.broadcast %84 : vector<64x1xf32> to vector<64x64xf32>
    %86 = arith.mulf %81, %85 : vector<64x64xf32>
    %87 = arith.truncf %86 : vector<64x64xf32> to vector<64x64xbf16>
    %88 = arith.truncf %70 : vector<64x32xf32> to vector<64x32xbf16>
    %cst_24 = arith.constant dense<0.000000e+00> : vector<64x32xf32>
    %89 = tpu.matmul %87, %88, %cst_24 {dimension_numbers = #tpu.dot_dimension_numbers<[1], [0], [0], [1], [0, 0, 1, 1], [], []>} : vector<64x64xbf16>, vector<64x32xbf16>, vector<64x32xf32> -> vector<64x32xf32>
    %90 = arith.addf %60, %89 : vector<64x32xf32>
    %91 = vector.extract_strided_slice %90 {offsets = [0, 0], sizes = [16, 32], strides = [1, 1]} : vector<64x32xf32> to vector<16x32xf32>
    %92 = vector.extract_strided_slice %90 {offsets = [16, 0], sizes = [16, 32], strides = [1, 1]} : vector<64x32xf32> to vector<16x32xf32>
    %93 = vector.extract_strided_slice %90 {offsets = [32, 0], sizes = [16, 32], strides = [1, 1]} : vector<64x32xf32> to vector<16x32xf32>
    %94 = vector.extract_strided_slice %90 {offsets = [48, 0], sizes = [16, 32], strides = [1, 1]} : vector<64x32xf32> to vector<16x32xf32>
    %95 = tpu.concatenate %91, %92, %93, %94 in 1 : vector<16x32xf32>, vector<16x32xf32>, vector<16x32xf32>, vector<16x32xf32> -> vector<16x128xf32>
    %96 = vector.extract_strided_slice %41 {offsets = [4, 0], sizes = [1, 128], strides = [1, 1]} : vector<8x128xf32> to vector<1x128xf32>
    %97 = vector.extract_strided_slice %41 {offsets = [5, 0], sizes = [1, 128], strides = [1, 1]} : vector<8x128xf32> to vector<1x128xf32>
    %cst_25 = arith.constant dense<0.000000e+00> : vector<16xf32>
    %98 = vector.multi_reduction <add>, %95, %cst_25 [1] : vector<16x128xf32> to vector<16xf32>
    %99 = vector.shape_cast %98 : vector<16xf32> to vector<16x1xf32>
    %cst_26 = arith.constant 1.280000e+02 : f32
    %100 = vector.broadcast %cst_26 : f32 to vector<16x1xf32>
    %101 = arith.divf %99, %100 : vector<16x1xf32>
    %102 = vector.broadcast %101 : vector<16x1xf32> to vector<16x128xf32>
    %103 = arith.subf %95, %102 : vector<16x128xf32>
    %104 = arith.mulf %103, %103 : vector<16x128xf32>
    %cst_27 = arith.constant dense<0.000000e+00> : vector<16xf32>
    %105 = vector.multi_reduction <add>, %104, %cst_27 [1] : vector<16x128xf32> to vector<16xf32>
    %106 = vector.shape_cast %105 : vector<16xf32> to vector<16x1xf32>
    %cst_28 = arith.constant 1.280000e+02 : f32
    %107 = vector.broadcast %cst_28 : f32 to vector<16x1xf32>
    %108 = arith.divf %106, %107 : vector<16x1xf32>
    %109 = vector.broadcast %101 : vector<16x1xf32> to vector<16x128xf32>
    %110 = arith.subf %95, %109 : vector<16x128xf32>
    %cst_29 = arith.constant 9.99999974E-6 : f32
    %111 = vector.broadcast %cst_29 : f32 to vector<16x1xf32>
    %112 = arith.addf %108, %111 : vector<16x1xf32>
    %113 = math.rsqrt %112 : vector<16x1xf32>
    %114 = vector.broadcast %113 : vector<16x1xf32> to vector<16x128xf32>
    %115 = arith.mulf %110, %114 : vector<16x128xf32>
    %116 = vector.broadcast %96 : vector<1x128xf32> to vector<16x128xf32>
    %117 = arith.mulf %115, %116 : vector<16x128xf32>
    %118 = vector.broadcast %97 : vector<1x128xf32> to vector<16x128xf32>
    %119 = arith.addf %117, %118 : vector<16x128xf32>
    %120 = arith.truncf %119 : vector<16x128xf32> to vector<16x128xbf16>
    %cst_30 = arith.constant dense<0.000000e+00> : vector<16x128xf32>
    %121 = tpu.matmul %120, %40, %cst_30 {dimension_numbers = #tpu.dot_dimension_numbers<[1], [0], [0], [1], [0, 0, 1, 1], [], []>} : vector<16x128xbf16>, vector<128x128xbf16>, vector<16x128xf32> -> vector<16x128xf32>
    %122 = vector.extract_strided_slice %41 {offsets = [3, 0], sizes = [1, 128], strides = [1, 1]} : vector<8x128xf32> to vector<1x128xf32>
    %123 = vector.broadcast %122 : vector<1x128xf32> to vector<16x128xf32>
    %124 = arith.addf %121, %123 : vector<16x128xf32>
    %cst_31 = arith.constant 0.000000e+00 : f32
    %125 = vector.broadcast %cst_31 : f32 to vector<16x128xf32>
    %126 = arith.maximumf %124, %125 : vector<16x128xf32>
    %127 = arith.addf %119, %126 : vector<16x128xf32>
    %128 = vector.extract_strided_slice %41 {offsets = [6, 0], sizes = [1, 128], strides = [1, 1]} : vector<8x128xf32> to vector<1x128xf32>
    %129 = vector.extract_strided_slice %41 {offsets = [7, 0], sizes = [1, 128], strides = [1, 1]} : vector<8x128xf32> to vector<1x128xf32>
    %cst_32 = arith.constant dense<0.000000e+00> : vector<16xf32>
    %130 = vector.multi_reduction <add>, %127, %cst_32 [1] : vector<16x128xf32> to vector<16xf32>
    %131 = vector.shape_cast %130 : vector<16xf32> to vector<16x1xf32>
    %cst_33 = arith.constant 1.280000e+02 : f32
    %132 = vector.broadcast %cst_33 : f32 to vector<16x1xf32>
    %133 = arith.divf %131, %132 : vector<16x1xf32>
    %134 = vector.broadcast %133 : vector<16x1xf32> to vector<16x128xf32>
    %135 = arith.subf %127, %134 : vector<16x128xf32>
    %136 = arith.mulf %135, %135 : vector<16x128xf32>
    %cst_34 = arith.constant dense<0.000000e+00> : vector<16xf32>
    %137 = vector.multi_reduction <add>, %136, %cst_34 [1] : vector<16x128xf32> to vector<16xf32>
    %138 = vector.shape_cast %137 : vector<16xf32> to vector<16x1xf32>
    %cst_35 = arith.constant 1.280000e+02 : f32
    %139 = vector.broadcast %cst_35 : f32 to vector<16x1xf32>
    %140 = arith.divf %138, %139 : vector<16x1xf32>
    %141 = vector.broadcast %133 : vector<16x1xf32> to vector<16x128xf32>
    %142 = arith.subf %127, %141 : vector<16x128xf32>
    %cst_36 = arith.constant 9.99999974E-6 : f32
    %143 = vector.broadcast %cst_36 : f32 to vector<16x1xf32>
    %144 = arith.addf %140, %143 : vector<16x1xf32>
    %145 = math.rsqrt %144 : vector<16x1xf32>
    %146 = vector.broadcast %145 : vector<16x1xf32> to vector<16x128xf32>
    %147 = arith.mulf %142, %146 : vector<16x128xf32>
    %148 = vector.broadcast %128 : vector<1x128xf32> to vector<16x128xf32>
    %149 = arith.mulf %147, %148 : vector<16x128xf32>
    %150 = vector.broadcast %129 : vector<1x128xf32> to vector<16x128xf32>
    %151 = arith.addf %149, %150 : vector<16x128xf32>
    %c1 = arith.constant 1 : index
    %c0_37 = arith.constant 0 : index
    %c0_38 = arith.constant 0 : index
    %152 = vector.load %arg4[%c1, %c0_37, %c0_38] : memref<3x128x384xbf16, #tpu.memory_space<vmem>>, vector<1x128x384xbf16>
    %153 = vector.shape_cast %152 : vector<1x128x384xbf16> to vector<128x384xbf16>
    %c1_39 = arith.constant 1 : index
    %c0_40 = arith.constant 0 : index
    %c0_41 = arith.constant 0 : index
    %154 = vector.load %arg5[%c1_39, %c0_40, %c0_41] : memref<4x128x128xbf16, #tpu.memory_space<vmem>>, vector<1x128x128xbf16>
    %155 = vector.shape_cast %154 : vector<1x128x128xbf16> to vector<128x128xbf16>
    %156 = vector.extract_strided_slice %0 {offsets = [16, 0], sizes = [8, 128], strides = [1, 1]} : vector<34x128xf32> to vector<8x128xf32>
    %157 = arith.truncf %151 : vector<16x128xf32> to vector<16x128xbf16>
    %cst_42 = arith.constant dense<0.000000e+00> : vector<16x384xf32>
    %158 = tpu.matmul %157, %153, %cst_42 {dimension_numbers = #tpu.dot_dimension_numbers<[1], [0], [0], [1], [0, 0, 1, 1], [], []>} : vector<16x128xbf16>, vector<128x384xbf16>, vector<16x384xf32> -> vector<16x384xf32>
    %159 = vector.extract_strided_slice %158 {offsets = [0, 0], sizes = [16, 128], strides = [1, 1]} : vector<16x384xf32> to vector<16x128xf32>
    %160 = vector.extract_strided_slice %156 {offsets = [0, 0], sizes = [1, 128], strides = [1, 1]} : vector<8x128xf32> to vector<1x128xf32>
    %161 = vector.broadcast %160 : vector<1x128xf32> to vector<16x128xf32>
    %162 = arith.addf %159, %161 : vector<16x128xf32>
    %163 = vector.extract_strided_slice %158 {offsets = [0, 128], sizes = [16, 128], strides = [1, 1]} : vector<16x384xf32> to vector<16x128xf32>
    %164 = vector.extract_strided_slice %156 {offsets = [1, 0], sizes = [1, 128], strides = [1, 1]} : vector<8x128xf32> to vector<1x128xf32>
    %165 = vector.broadcast %164 : vector<1x128xf32> to vector<16x128xf32>
    %166 = arith.addf %163, %165 : vector<16x128xf32>
    %167 = vector.extract_strided_slice %158 {offsets = [0, 256], sizes = [16, 128], strides = [1, 1]} : vector<16x384xf32> to vector<16x128xf32>
    %168 = vector.extract_strided_slice %156 {offsets = [2, 0], sizes = [1, 128], strides = [1, 1]} : vector<8x128xf32> to vector<1x128xf32>
    %169 = vector.broadcast %168 : vector<1x128xf32> to vector<16x128xf32>
    %170 = arith.addf %167, %169 : vector<16x128xf32>
    %171 = vector.extract_strided_slice %162 {offsets = [0, 0], sizes = [16, 32], strides = [1, 1]} : vector<16x128xf32> to vector<16x32xf32>
    %172 = vector.extract_strided_slice %162 {offsets = [0, 32], sizes = [16, 32], strides = [1, 1]} : vector<16x128xf32> to vector<16x32xf32>
    %173 = vector.extract_strided_slice %162 {offsets = [0, 64], sizes = [16, 32], strides = [1, 1]} : vector<16x128xf32> to vector<16x32xf32>
    %174 = vector.extract_strided_slice %162 {offsets = [0, 96], sizes = [16, 32], strides = [1, 1]} : vector<16x128xf32> to vector<16x32xf32>
    %175 = tpu.concatenate %171, %172, %173, %174 in 0 : vector<16x32xf32>, vector<16x32xf32>, vector<16x32xf32>, vector<16x32xf32> -> vector<64x32xf32>
    %176 = vector.extract_strided_slice %166 {offsets = [0, 0], sizes = [16, 32], strides = [1, 1]} : vector<16x128xf32> to vector<16x32xf32>
    %177 = vector.extract_strided_slice %166 {offsets = [0, 32], sizes = [16, 32], strides = [1, 1]} : vector<16x128xf32> to vector<16x32xf32>
    %178 = vector.extract_strided_slice %166 {offsets = [0, 64], sizes = [16, 32], strides = [1, 1]} : vector<16x128xf32> to vector<16x32xf32>
    %179 = vector.extract_strided_slice %166 {offsets = [0, 96], sizes = [16, 32], strides = [1, 1]} : vector<16x128xf32> to vector<16x32xf32>
    %180 = tpu.concatenate %176, %177, %178, %179 in 0 : vector<16x32xf32>, vector<16x32xf32>, vector<16x32xf32>, vector<16x32xf32> -> vector<64x32xf32>
    %181 = vector.extract_strided_slice %170 {offsets = [0, 0], sizes = [16, 32], strides = [1, 1]} : vector<16x128xf32> to vector<16x32xf32>
    %182 = vector.extract_strided_slice %170 {offsets = [0, 32], sizes = [16, 32], strides = [1, 1]} : vector<16x128xf32> to vector<16x32xf32>
    %183 = vector.extract_strided_slice %170 {offsets = [0, 64], sizes = [16, 32], strides = [1, 1]} : vector<16x128xf32> to vector<16x32xf32>
    %184 = vector.extract_strided_slice %170 {offsets = [0, 96], sizes = [16, 32], strides = [1, 1]} : vector<16x128xf32> to vector<16x32xf32>
    %185 = tpu.concatenate %181, %182, %183, %184 in 0 : vector<16x32xf32>, vector<16x32xf32>, vector<16x32xf32>, vector<16x32xf32> -> vector<64x32xf32>
    %186 = arith.truncf %175 : vector<64x32xf32> to vector<64x32xbf16>
    %187 = arith.truncf %180 : vector<64x32xf32> to vector<64x32xbf16>
    %cst_43 = arith.constant dense<0.000000e+00> : vector<64x64xf32>
    %188 = tpu.matmul %186, %187, %cst_43 {dimension_numbers = #tpu.dot_dimension_numbers<[1], [1], [0], [0], [0, 0, 1, 0], [], []>} : vector<64x32xbf16>, vector<64x32xbf16>, vector<64x64xf32> -> vector<64x64xf32>
    %cst_44 = arith.constant 0.176776692 : f32
    %189 = vector.broadcast %cst_44 : f32 to vector<64x64xf32>
    %190 = arith.mulf %188, %189 : vector<64x64xf32>
    %191 = arith.addf %190, %35 : vector<64x64xf32>
    %cst_45 = arith.constant dense<0xFF800000> : vector<64xf32>
    %192 = vector.multi_reduction <maximumf>, %191, %cst_45 [1] : vector<64x64xf32> to vector<64xf32>
    %193 = vector.shape_cast %192 : vector<64xf32> to vector<64x1xf32>
    %194 = vector.broadcast %193 : vector<64x1xf32> to vector<64x64xf32>
    %195 = arith.subf %191, %194 : vector<64x64xf32>
    %196 = math.exp %195 : vector<64x64xf32>
    %cst_46 = arith.constant dense<0.000000e+00> : vector<64xf32>
    %197 = vector.multi_reduction <add>, %196, %cst_46 [1] : vector<64x64xf32> to vector<64xf32>
    %198 = vector.shape_cast %197 : vector<64xf32> to vector<64x1xf32>
    %199 = tpu.reciprocal %198 {approx = true} : vector<64x1xf32> -> vector<64x1xf32>
    %200 = vector.broadcast %199 : vector<64x1xf32> to vector<64x64xf32>
    %201 = arith.mulf %196, %200 : vector<64x64xf32>
    %202 = arith.truncf %201 : vector<64x64xf32> to vector<64x64xbf16>
    %203 = arith.truncf %185 : vector<64x32xf32> to vector<64x32xbf16>
    %cst_47 = arith.constant dense<0.000000e+00> : vector<64x32xf32>
    %204 = tpu.matmul %202, %203, %cst_47 {dimension_numbers = #tpu.dot_dimension_numbers<[1], [0], [0], [1], [0, 0, 1, 1], [], []>} : vector<64x64xbf16>, vector<64x32xbf16>, vector<64x32xf32> -> vector<64x32xf32>
    %205 = arith.addf %175, %204 : vector<64x32xf32>
    %206 = vector.extract_strided_slice %205 {offsets = [0, 0], sizes = [16, 32], strides = [1, 1]} : vector<64x32xf32> to vector<16x32xf32>
    %207 = vector.extract_strided_slice %205 {offsets = [16, 0], sizes = [16, 32], strides = [1, 1]} : vector<64x32xf32> to vector<16x32xf32>
    %208 = vector.extract_strided_slice %205 {offsets = [32, 0], sizes = [16, 32], strides = [1, 1]} : vector<64x32xf32> to vector<16x32xf32>
    %209 = vector.extract_strided_slice %205 {offsets = [48, 0], sizes = [16, 32], strides = [1, 1]} : vector<64x32xf32> to vector<16x32xf32>
    %210 = tpu.concatenate %206, %207, %208, %209 in 1 : vector<16x32xf32>, vector<16x32xf32>, vector<16x32xf32>, vector<16x32xf32> -> vector<16x128xf32>
    %211 = vector.extract_strided_slice %156 {offsets = [4, 0], sizes = [1, 128], strides = [1, 1]} : vector<8x128xf32> to vector<1x128xf32>
    %212 = vector.extract_strided_slice %156 {offsets = [5, 0], sizes = [1, 128], strides = [1, 1]} : vector<8x128xf32> to vector<1x128xf32>
    %cst_48 = arith.constant dense<0.000000e+00> : vector<16xf32>
    %213 = vector.multi_reduction <add>, %210, %cst_48 [1] : vector<16x128xf32> to vector<16xf32>
    %214 = vector.shape_cast %213 : vector<16xf32> to vector<16x1xf32>
    %cst_49 = arith.constant 1.280000e+02 : f32
    %215 = vector.broadcast %cst_49 : f32 to vector<16x1xf32>
    %216 = arith.divf %214, %215 : vector<16x1xf32>
    %217 = vector.broadcast %216 : vector<16x1xf32> to vector<16x128xf32>
    %218 = arith.subf %210, %217 : vector<16x128xf32>
    %219 = arith.mulf %218, %218 : vector<16x128xf32>
    %cst_50 = arith.constant dense<0.000000e+00> : vector<16xf32>
    %220 = vector.multi_reduction <add>, %219, %cst_50 [1] : vector<16x128xf32> to vector<16xf32>
    %221 = vector.shape_cast %220 : vector<16xf32> to vector<16x1xf32>
    %cst_51 = arith.constant 1.280000e+02 : f32
    %222 = vector.broadcast %cst_51 : f32 to vector<16x1xf32>
    %223 = arith.divf %221, %222 : vector<16x1xf32>
    %224 = vector.broadcast %216 : vector<16x1xf32> to vector<16x128xf32>
    %225 = arith.subf %210, %224 : vector<16x128xf32>
    %cst_52 = arith.constant 9.99999974E-6 : f32
    %226 = vector.broadcast %cst_52 : f32 to vector<16x1xf32>
    %227 = arith.addf %223, %226 : vector<16x1xf32>
    %228 = math.rsqrt %227 : vector<16x1xf32>
    %229 = vector.broadcast %228 : vector<16x1xf32> to vector<16x128xf32>
    %230 = arith.mulf %225, %229 : vector<16x128xf32>
    %231 = vector.broadcast %211 : vector<1x128xf32> to vector<16x128xf32>
    %232 = arith.mulf %230, %231 : vector<16x128xf32>
    %233 = vector.broadcast %212 : vector<1x128xf32> to vector<16x128xf32>
    %234 = arith.addf %232, %233 : vector<16x128xf32>
    %235 = arith.truncf %234 : vector<16x128xf32> to vector<16x128xbf16>
    %cst_53 = arith.constant dense<0.000000e+00> : vector<16x128xf32>
    %236 = tpu.matmul %235, %155, %cst_53 {dimension_numbers = #tpu.dot_dimension_numbers<[1], [0], [0], [1], [0, 0, 1, 1], [], []>} : vector<16x128xbf16>, vector<128x128xbf16>, vector<16x128xf32> -> vector<16x128xf32>
    %237 = vector.extract_strided_slice %156 {offsets = [3, 0], sizes = [1, 128], strides = [1, 1]} : vector<8x128xf32> to vector<1x128xf32>
    %238 = vector.broadcast %237 : vector<1x128xf32> to vector<16x128xf32>
    %239 = arith.addf %236, %238 : vector<16x128xf32>
    %cst_54 = arith.constant 0.000000e+00 : f32
    %240 = vector.broadcast %cst_54 : f32 to vector<16x128xf32>
    %241 = arith.maximumf %239, %240 : vector<16x128xf32>
    %242 = arith.addf %234, %241 : vector<16x128xf32>
    %243 = vector.extract_strided_slice %156 {offsets = [6, 0], sizes = [1, 128], strides = [1, 1]} : vector<8x128xf32> to vector<1x128xf32>
    %244 = vector.extract_strided_slice %156 {offsets = [7, 0], sizes = [1, 128], strides = [1, 1]} : vector<8x128xf32> to vector<1x128xf32>
    %cst_55 = arith.constant dense<0.000000e+00> : vector<16xf32>
    %245 = vector.multi_reduction <add>, %242, %cst_55 [1] : vector<16x128xf32> to vector<16xf32>
    %246 = vector.shape_cast %245 : vector<16xf32> to vector<16x1xf32>
    %cst_56 = arith.constant 1.280000e+02 : f32
    %247 = vector.broadcast %cst_56 : f32 to vector<16x1xf32>
    %248 = arith.divf %246, %247 : vector<16x1xf32>
    %249 = vector.broadcast %248 : vector<16x1xf32> to vector<16x128xf32>
    %250 = arith.subf %242, %249 : vector<16x128xf32>
    %251 = arith.mulf %250, %250 : vector<16x128xf32>
    %cst_57 = arith.constant dense<0.000000e+00> : vector<16xf32>
    %252 = vector.multi_reduction <add>, %251, %cst_57 [1] : vector<16x128xf32> to vector<16xf32>
    %253 = vector.shape_cast %252 : vector<16xf32> to vector<16x1xf32>
    %cst_58 = arith.constant 1.280000e+02 : f32
    %254 = vector.broadcast %cst_58 : f32 to vector<16x1xf32>
    %255 = arith.divf %253, %254 : vector<16x1xf32>
    %256 = vector.broadcast %248 : vector<16x1xf32> to vector<16x128xf32>
    %257 = arith.subf %242, %256 : vector<16x128xf32>
    %cst_59 = arith.constant 9.99999974E-6 : f32
    %258 = vector.broadcast %cst_59 : f32 to vector<16x1xf32>
    %259 = arith.addf %255, %258 : vector<16x1xf32>
    %260 = math.rsqrt %259 : vector<16x1xf32>
    %261 = vector.broadcast %260 : vector<16x1xf32> to vector<16x128xf32>
    %262 = arith.mulf %257, %261 : vector<16x128xf32>
    %263 = vector.broadcast %243 : vector<1x128xf32> to vector<16x128xf32>
    %264 = arith.mulf %262, %263 : vector<16x128xf32>
    %265 = vector.broadcast %244 : vector<1x128xf32> to vector<16x128xf32>
    %266 = arith.addf %264, %265 : vector<16x128xf32>
    %267 = vector.extract_strided_slice %0 {offsets = [3, 0], sizes = [1, 128], strides = [1, 1]} : vector<34x128xf32> to vector<1x128xf32>
    %268 = vector.shape_cast %267 : vector<1x128xf32> to vector<1x128xf32>
    %269 = vector.broadcast %268 : vector<1x128xf32> to vector<2x128xf32>
    %c2 = arith.constant 2 : index
    %c0_60 = arith.constant 0 : index
    %c0_61 = arith.constant 0 : index
    %270 = vector.load %arg4[%c2, %c0_60, %c0_61] : memref<3x128x384xbf16, #tpu.memory_space<vmem>>, vector<1x128x384xbf16>
    %271 = vector.shape_cast %270 : vector<1x128x384xbf16> to vector<128x384xbf16>
    %c2_62 = arith.constant 2 : index
    %c0_63 = arith.constant 0 : index
    %c0_64 = arith.constant 0 : index
    %272 = vector.load %arg5[%c2_62, %c0_63, %c0_64] : memref<4x128x128xbf16, #tpu.memory_space<vmem>>, vector<1x128x128xbf16>
    %273 = vector.shape_cast %272 : vector<1x128x128xbf16> to vector<128x128xbf16>
    %274 = vector.extract_strided_slice %0 {offsets = [24, 0], sizes = [8, 128], strides = [1, 1]} : vector<34x128xf32> to vector<8x128xf32>
    %275 = arith.truncf %269 : vector<2x128xf32> to vector<2x128xbf16>
    %cst_65 = arith.constant dense<0.000000e+00> : vector<2x384xf32>
    %276 = tpu.matmul %275, %271, %cst_65 {dimension_numbers = #tpu.dot_dimension_numbers<[1], [0], [0], [1], [0, 0, 1, 1], [], []>} : vector<2x128xbf16>, vector<128x384xbf16>, vector<2x384xf32> -> vector<2x384xf32>
    %277 = arith.truncf %266 : vector<16x128xf32> to vector<16x128xbf16>
    %cst_66 = arith.constant dense<0.000000e+00> : vector<16x384xf32>
    %278 = tpu.matmul %277, %271, %cst_66 {dimension_numbers = #tpu.dot_dimension_numbers<[1], [0], [0], [1], [0, 0, 1, 1], [], []>} : vector<16x128xbf16>, vector<128x384xbf16>, vector<16x384xf32> -> vector<16x384xf32>
    %279 = vector.extract_strided_slice %276 {offsets = [0, 0], sizes = [2, 128], strides = [1, 1]} : vector<2x384xf32> to vector<2x128xf32>
    %280 = vector.extract_strided_slice %274 {offsets = [0, 0], sizes = [1, 128], strides = [1, 1]} : vector<8x128xf32> to vector<1x128xf32>
    %281 = vector.broadcast %280 : vector<1x128xf32> to vector<2x128xf32>
    %282 = arith.addf %279, %281 : vector<2x128xf32>
    %283 = vector.extract_strided_slice %278 {offsets = [0, 128], sizes = [16, 128], strides = [1, 1]} : vector<16x384xf32> to vector<16x128xf32>
    %284 = vector.extract_strided_slice %274 {offsets = [1, 0], sizes = [1, 128], strides = [1, 1]} : vector<8x128xf32> to vector<1x128xf32>
    %285 = vector.broadcast %284 : vector<1x128xf32> to vector<16x128xf32>
    %286 = arith.addf %283, %285 : vector<16x128xf32>
    %287 = vector.extract_strided_slice %278 {offsets = [0, 256], sizes = [16, 128], strides = [1, 1]} : vector<16x384xf32> to vector<16x128xf32>
    %288 = vector.extract_strided_slice %274 {offsets = [2, 0], sizes = [1, 128], strides = [1, 1]} : vector<8x128xf32> to vector<1x128xf32>
    %289 = vector.broadcast %288 : vector<1x128xf32> to vector<16x128xf32>
    %290 = arith.addf %287, %289 : vector<16x128xf32>
    %291 = vector.extract_strided_slice %282 {offsets = [0, 0], sizes = [2, 32], strides = [1, 1]} : vector<2x128xf32> to vector<2x32xf32>
    %292 = vector.extract_strided_slice %282 {offsets = [0, 32], sizes = [2, 32], strides = [1, 1]} : vector<2x128xf32> to vector<2x32xf32>
    %293 = vector.extract_strided_slice %282 {offsets = [0, 64], sizes = [2, 32], strides = [1, 1]} : vector<2x128xf32> to vector<2x32xf32>
    %294 = vector.extract_strided_slice %282 {offsets = [0, 96], sizes = [2, 32], strides = [1, 1]} : vector<2x128xf32> to vector<2x32xf32>
    %295 = tpu.concatenate %291, %292, %293, %294 in 0 : vector<2x32xf32>, vector<2x32xf32>, vector<2x32xf32>, vector<2x32xf32> -> vector<8x32xf32>
    %296 = vector.extract_strided_slice %286 {offsets = [0, 0], sizes = [16, 32], strides = [1, 1]} : vector<16x128xf32> to vector<16x32xf32>
    %297 = vector.extract_strided_slice %286 {offsets = [0, 32], sizes = [16, 32], strides = [1, 1]} : vector<16x128xf32> to vector<16x32xf32>
    %298 = vector.extract_strided_slice %286 {offsets = [0, 64], sizes = [16, 32], strides = [1, 1]} : vector<16x128xf32> to vector<16x32xf32>
    %299 = vector.extract_strided_slice %286 {offsets = [0, 96], sizes = [16, 32], strides = [1, 1]} : vector<16x128xf32> to vector<16x32xf32>
    %300 = tpu.concatenate %296, %297, %298, %299 in 0 : vector<16x32xf32>, vector<16x32xf32>, vector<16x32xf32>, vector<16x32xf32> -> vector<64x32xf32>
    %301 = vector.extract_strided_slice %290 {offsets = [0, 0], sizes = [16, 32], strides = [1, 1]} : vector<16x128xf32> to vector<16x32xf32>
    %302 = vector.extract_strided_slice %290 {offsets = [0, 32], sizes = [16, 32], strides = [1, 1]} : vector<16x128xf32> to vector<16x32xf32>
    %303 = vector.extract_strided_slice %290 {offsets = [0, 64], sizes = [16, 32], strides = [1, 1]} : vector<16x128xf32> to vector<16x32xf32>
    %304 = vector.extract_strided_slice %290 {offsets = [0, 96], sizes = [16, 32], strides = [1, 1]} : vector<16x128xf32> to vector<16x32xf32>
    %305 = tpu.concatenate %301, %302, %303, %304 in 0 : vector<16x32xf32>, vector<16x32xf32>, vector<16x32xf32>, vector<16x32xf32> -> vector<64x32xf32>
    %306 = arith.truncf %295 : vector<8x32xf32> to vector<8x32xbf16>
    %307 = arith.truncf %300 : vector<64x32xf32> to vector<64x32xbf16>
    %cst_67 = arith.constant dense<0.000000e+00> : vector<8x64xf32>
    %308 = tpu.matmul %306, %307, %cst_67 {dimension_numbers = #tpu.dot_dimension_numbers<[1], [1], [0], [0], [0, 0, 1, 0], [], []>} : vector<8x32xbf16>, vector<64x32xbf16>, vector<8x64xf32> -> vector<8x64xf32>
    %cst_68 = arith.constant 0.176776692 : f32
    %309 = vector.broadcast %cst_68 : f32 to vector<8x64xf32>
    %310 = arith.mulf %308, %309 : vector<8x64xf32>
    %311 = arith.addf %310, %36 : vector<8x64xf32>
    %cst_69 = arith.constant dense<0xFF800000> : vector<8xf32>
    %312 = vector.multi_reduction <maximumf>, %311, %cst_69 [1] : vector<8x64xf32> to vector<8xf32>
    %313 = vector.shape_cast %312 : vector<8xf32> to vector<8x1xf32>
    %314 = vector.broadcast %313 : vector<8x1xf32> to vector<8x64xf32>
    %315 = arith.subf %311, %314 : vector<8x64xf32>
    %316 = math.exp %315 : vector<8x64xf32>
    %cst_70 = arith.constant dense<0.000000e+00> : vector<8xf32>
    %317 = vector.multi_reduction <add>, %316, %cst_70 [1] : vector<8x64xf32> to vector<8xf32>
    %318 = vector.shape_cast %317 : vector<8xf32> to vector<8x1xf32>
    %319 = tpu.reciprocal %318 {approx = true} : vector<8x1xf32> -> vector<8x1xf32>
    %320 = vector.broadcast %319 : vector<8x1xf32> to vector<8x64xf32>
    %321 = arith.mulf %316, %320 : vector<8x64xf32>
    %322 = arith.truncf %321 : vector<8x64xf32> to vector<8x64xbf16>
    %323 = arith.truncf %305 : vector<64x32xf32> to vector<64x32xbf16>
    %cst_71 = arith.constant dense<0.000000e+00> : vector<8x32xf32>
    %324 = tpu.matmul %322, %323, %cst_71 {dimension_numbers = #tpu.dot_dimension_numbers<[1], [0], [0], [1], [0, 0, 1, 1], [], []>} : vector<8x64xbf16>, vector<64x32xbf16>, vector<8x32xf32> -> vector<8x32xf32>
    %325 = arith.addf %295, %324 : vector<8x32xf32>
    %326 = vector.extract_strided_slice %325 {offsets = [0, 0], sizes = [2, 32], strides = [1, 1]} : vector<8x32xf32> to vector<2x32xf32>
    %327 = vector.extract_strided_slice %325 {offsets = [2, 0], sizes = [2, 32], strides = [1, 1]} : vector<8x32xf32> to vector<2x32xf32>
    %328 = vector.extract_strided_slice %325 {offsets = [4, 0], sizes = [2, 32], strides = [1, 1]} : vector<8x32xf32> to vector<2x32xf32>
    %329 = vector.extract_strided_slice %325 {offsets = [6, 0], sizes = [2, 32], strides = [1, 1]} : vector<8x32xf32> to vector<2x32xf32>
    %330 = tpu.concatenate %326, %327, %328, %329 in 1 : vector<2x32xf32>, vector<2x32xf32>, vector<2x32xf32>, vector<2x32xf32> -> vector<2x128xf32>
    %331 = vector.extract_strided_slice %274 {offsets = [4, 0], sizes = [1, 128], strides = [1, 1]} : vector<8x128xf32> to vector<1x128xf32>
    %332 = vector.extract_strided_slice %274 {offsets = [5, 0], sizes = [1, 128], strides = [1, 1]} : vector<8x128xf32> to vector<1x128xf32>
    %cst_72 = arith.constant dense<0.000000e+00> : vector<2xf32>
    %333 = vector.multi_reduction <add>, %330, %cst_72 [1] : vector<2x128xf32> to vector<2xf32>
    %334 = vector.shape_cast %333 : vector<2xf32> to vector<2x1xf32>
    %cst_73 = arith.constant 1.280000e+02 : f32
    %335 = vector.broadcast %cst_73 : f32 to vector<2x1xf32>
    %336 = arith.divf %334, %335 : vector<2x1xf32>
    %337 = vector.broadcast %336 : vector<2x1xf32> to vector<2x128xf32>
    %338 = arith.subf %330, %337 : vector<2x128xf32>
    %339 = arith.mulf %338, %338 : vector<2x128xf32>
    %cst_74 = arith.constant dense<0.000000e+00> : vector<2xf32>
    %340 = vector.multi_reduction <add>, %339, %cst_74 [1] : vector<2x128xf32> to vector<2xf32>
    %341 = vector.shape_cast %340 : vector<2xf32> to vector<2x1xf32>
    %cst_75 = arith.constant 1.280000e+02 : f32
    %342 = vector.broadcast %cst_75 : f32 to vector<2x1xf32>
    %343 = arith.divf %341, %342 : vector<2x1xf32>
    %344 = vector.broadcast %336 : vector<2x1xf32> to vector<2x128xf32>
    %345 = arith.subf %330, %344 : vector<2x128xf32>
    %cst_76 = arith.constant 9.99999974E-6 : f32
    %346 = vector.broadcast %cst_76 : f32 to vector<2x1xf32>
    %347 = arith.addf %343, %346 : vector<2x1xf32>
    %348 = math.rsqrt %347 : vector<2x1xf32>
    %349 = vector.broadcast %348 : vector<2x1xf32> to vector<2x128xf32>
    %350 = arith.mulf %345, %349 : vector<2x128xf32>
    %351 = vector.broadcast %331 : vector<1x128xf32> to vector<2x128xf32>
    %352 = arith.mulf %350, %351 : vector<2x128xf32>
    %353 = vector.broadcast %332 : vector<1x128xf32> to vector<2x128xf32>
    %354 = arith.addf %352, %353 : vector<2x128xf32>
    %355 = arith.truncf %354 : vector<2x128xf32> to vector<2x128xbf16>
    %cst_77 = arith.constant dense<0.000000e+00> : vector<2x128xf32>
    %356 = tpu.matmul %355, %273, %cst_77 {dimension_numbers = #tpu.dot_dimension_numbers<[1], [0], [0], [1], [0, 0, 1, 1], [], []>} : vector<2x128xbf16>, vector<128x128xbf16>, vector<2x128xf32> -> vector<2x128xf32>
    %357 = vector.extract_strided_slice %274 {offsets = [3, 0], sizes = [1, 128], strides = [1, 1]} : vector<8x128xf32> to vector<1x128xf32>
    %358 = vector.broadcast %357 : vector<1x128xf32> to vector<2x128xf32>
    %359 = arith.addf %356, %358 : vector<2x128xf32>
    %cst_78 = arith.constant 0.000000e+00 : f32
    %360 = vector.broadcast %cst_78 : f32 to vector<2x128xf32>
    %361 = arith.maximumf %359, %360 : vector<2x128xf32>
    %362 = arith.addf %354, %361 : vector<2x128xf32>
    %363 = vector.extract_strided_slice %274 {offsets = [6, 0], sizes = [1, 128], strides = [1, 1]} : vector<8x128xf32> to vector<1x128xf32>
    %364 = vector.extract_strided_slice %274 {offsets = [7, 0], sizes = [1, 128], strides = [1, 1]} : vector<8x128xf32> to vector<1x128xf32>
    %cst_79 = arith.constant dense<0.000000e+00> : vector<2xf32>
    %365 = vector.multi_reduction <add>, %362, %cst_79 [1] : vector<2x128xf32> to vector<2xf32>
    %366 = vector.shape_cast %365 : vector<2xf32> to vector<2x1xf32>
    %cst_80 = arith.constant 1.280000e+02 : f32
    %367 = vector.broadcast %cst_80 : f32 to vector<2x1xf32>
    %368 = arith.divf %366, %367 : vector<2x1xf32>
    %369 = vector.broadcast %368 : vector<2x1xf32> to vector<2x128xf32>
    %370 = arith.subf %362, %369 : vector<2x128xf32>
    %371 = arith.mulf %370, %370 : vector<2x128xf32>
    %cst_81 = arith.constant dense<0.000000e+00> : vector<2xf32>
    %372 = vector.multi_reduction <add>, %371, %cst_81 [1] : vector<2x128xf32> to vector<2xf32>
    %373 = vector.shape_cast %372 : vector<2xf32> to vector<2x1xf32>
    %cst_82 = arith.constant 1.280000e+02 : f32
    %374 = vector.broadcast %cst_82 : f32 to vector<2x1xf32>
    %375 = arith.divf %373, %374 : vector<2x1xf32>
    %376 = vector.broadcast %368 : vector<2x1xf32> to vector<2x128xf32>
    %377 = arith.subf %362, %376 : vector<2x128xf32>
    %cst_83 = arith.constant 9.99999974E-6 : f32
    %378 = vector.broadcast %cst_83 : f32 to vector<2x1xf32>
    %379 = arith.addf %375, %378 : vector<2x1xf32>
    %380 = math.rsqrt %379 : vector<2x1xf32>
    %381 = vector.broadcast %380 : vector<2x1xf32> to vector<2x128xf32>
    %382 = arith.mulf %377, %381 : vector<2x128xf32>
    %383 = vector.broadcast %363 : vector<1x128xf32> to vector<2x128xf32>
    %384 = arith.mulf %382, %383 : vector<2x128xf32>
    %385 = vector.broadcast %364 : vector<1x128xf32> to vector<2x128xf32>
    %386 = arith.addf %384, %385 : vector<2x128xf32>
    %387 = arith.truncf %386 : vector<2x128xf32> to vector<2x128xbf16>
    %c3 = arith.constant 3 : index
    %c0_84 = arith.constant 0 : index
    %c0_85 = arith.constant 0 : index
    %388 = vector.load %arg5[%c3, %c0_84, %c0_85] : memref<4x128x128xbf16, #tpu.memory_space<vmem>>, vector<1x128x128xbf16>
    %389 = vector.shape_cast %388 : vector<1x128x128xbf16> to vector<128x128xbf16>
    %cst_86 = arith.constant dense<0.000000e+00> : vector<2x128xf32>
    %390 = tpu.matmul %387, %389, %cst_86 {dimension_numbers = #tpu.dot_dimension_numbers<[1], [0], [0], [1], [0, 0, 1, 1], [], []>} : vector<2x128xbf16>, vector<128x128xbf16>, vector<2x128xf32> -> vector<2x128xf32>
    %391 = vector.extract_strided_slice %0 {offsets = [4, 0], sizes = [1, 128], strides = [1, 1]} : vector<34x128xf32> to vector<1x128xf32>
    %392 = vector.broadcast %391 : vector<1x128xf32> to vector<2x128xf32>
    %393 = arith.addf %390, %392 : vector<2x128xf32>
    %394 = arith.mulf %393, %393 : vector<2x128xf32>
    %cst_87 = arith.constant dense<0.000000e+00> : vector<2xf32>
    %395 = vector.multi_reduction <add>, %394, %cst_87 [1] : vector<2x128xf32> to vector<2xf32>
    %396 = vector.shape_cast %395 : vector<2xf32> to vector<2x1xf32>
    %cst_88 = arith.constant 1.000000e-24 : f32
    %397 = vector.broadcast %cst_88 : f32 to vector<2x1xf32>
    %398 = arith.maximumf %396, %397 : vector<2x1xf32>
    %399 = math.rsqrt %398 : vector<2x1xf32>
    %400 = vector.broadcast %399 : vector<2x1xf32> to vector<2x128xf32>
    %401 = arith.mulf %393, %400 : vector<2x128xf32>
    %402 = vector.extract_strided_slice %0 {offsets = [32, 0], sizes = [2, 128], strides = [1, 1]} : vector<34x128xf32> to vector<2x128xf32>
    %403 = arith.mulf %401, %402 : vector<2x128xf32>
    %cst_89 = arith.constant dense<0.000000e+00> : vector<2xf32>
    %404 = vector.multi_reduction <add>, %403, %cst_89 [1] : vector<2x128xf32> to vector<2xf32>
    %405 = vector.shape_cast %404 : vector<2xf32> to vector<2x1xf32>
    %406 = vector.shape_cast %405 : vector<2x1xf32> to vector<2x1xf32>
    %407 = vector.broadcast %406 : vector<2x1xf32> to vector<2x128xf32>
    %c0_90 = arith.constant 0 : index
    %c0_91 = arith.constant 0 : index
    %408 = vector.load %arg7[%c0_90, %c0_91] : memref<2x128xf32, #tpu.memory_space<vmem>>, vector<2x128xf32>
    tpu.vector_store %arg7[%c0_90, %c0_91], %407 {strides = array<i32>} : memref<2x128xf32, #tpu.memory_space<vmem>>, vector<2x128xf32>,
    return
  }
  func.func @transform_0(%arg0: i32) -> (i32, i32) {
    %c0_i32 = arith.constant 0 : i32
    %c0_i32_0 = arith.constant 0 : i32
    %c0_i32_1 = arith.constant 0 : i32
    return %c0_i32, %c0_i32_0 : i32, i32
  }
  func.func @transform_1(%arg0: i32) -> (i32, i32) {
    %c0_i32 = arith.constant 0 : i32
    %c0_i32_0 = arith.constant 0 : i32
    %c0_i32_1 = arith.constant 0 : i32
    return %c0_i32, %c0_i32_0 : i32, i32
  }
  func.func @transform_2(%arg0: i32) -> (i32, i32) {
    %c0_i32 = arith.constant 0 : i32
    %c0_i32_0 = arith.constant 0 : i32
    %c0_i32_1 = arith.constant 0 : i32
    return %c0_i32, %c0_i32_0 : i32, i32
  }
  func.func @transform_3(%arg0: i32) -> (i32, i32, i32) {
    %c0_i32 = arith.constant 0 : i32
    %c0_i32_0 = arith.constant 0 : i32
    %c0_i32_1 = arith.constant 0 : i32
    %c0_i32_2 = arith.constant 0 : i32
    return %c0_i32, %c0_i32_0, %c0_i32_1 : i32, i32, i32
  }
  func.func @transform_4(%arg0: i32) -> (i32, i32, i32) {
    %c0_i32 = arith.constant 0 : i32
    %c0_i32_0 = arith.constant 0 : i32
    %c0_i32_1 = arith.constant 0 : i32
    %c0_i32_2 = arith.constant 0 : i32
    return %c0_i32, %c0_i32_0, %c0_i32_1 : i32, i32, i32
  }
  func.func @transform_5(%arg0: i32) -> (i32, i32) {
    %c0_i32 = arith.constant 0 : i32
    %c0_i32_0 = arith.constant 0 : i32
    %c0_i32_1 = arith.constant 0 : i32
    return %c0_i32, %c0_i32_0 : i32, i32
  }
  func.func @transform_6(%arg0: i32) -> (i32, i32) {
    %c0_i32 = arith.constant 0 : i32
    %c0_i32_0 = arith.constant 0 : i32
    %c0_i32_1 = arith.constant 0 : i32
    return %c0_i32, %c0_i32_0 : i32, i32
  }
}

</mosaic_0001>

<bundles_post_ra>
// kernel: lpae_net_forward.1
= control target key start
LH: loop header
LB: loop body
LE: loop exit
PB: predicated region body
PF: predicated region fallthrough
CT: control target
= control target key end

     0   :  { %v3528_v0 = vmov 0.0   ;;  %vm3529_vm0 = vmmov 0   ;;  %vm77_vm1 = vcmask 523264   ;;  %v49_v8 = vlaneseq  ;;  %s3533_s9 = smov 96   ;;  %s4462_s2 = inlined_call_operand.vmem [shape: bf16[64,128], index: 2, kind: input, shape index: {}]   ;;  %s4463_s0 = inlined_call_operand.vmem [shape: f32[16,64], index: 0, kind: input, shape index: {}]   ;;  %s4464_s5 = inlined_call_operand.vmem [shape: f32[34,128], index: 5, kind: input, shape index: {}]   ;;  %s4465_s3 = inlined_call_operand.vmem [shape: bf16[3,128,384], index: 3, kind: input, shape index: {}]   ;;  %s4466_s1 = inlined_call_operand.vmem [shape: f32[72,64], index: 1, kind: input, shape index: {}]   ;;  %s4467_s4 = inlined_call_operand.vmem [shape: bf16[4,128,128], index: 4, kind: input, shape index: {}]   ;;  %s4468_s6 = inlined_call_operand.vmem [shape: f32[2,128], index: 6, kind: output, shape index: {}]  }
   0x1   :  { %2957 = vmatprep.subr.bf16.mxu0 %v3528_v0  ;;  %v3301_v1 = vld [vmem:[%s4462_s2 + $0x18] sm:$0xff]   ;;  %2965 = vmatprep.mubr.msk.bf16.mxu0 %vm3529_vm0, %v3528_v0  ;;  %v3302_v2 = vld [vmem:[%s4462_s2 + $0x10] sm:$0xff]   ;;  %v3303_v3 = vld [vmem:[%s4462_s2 + $0x8] sm:$0xff]   ;;  %v3530_v40 = vmov 0   ;;  %vm506_vm2 = vcmask 261120   ;;  %vm821_vm3 = vcmask 785408  }
   0x2   :  { %2958 = vmatpush3.bf16.msra.mxu0 %v3301_v1  ;;  %v3304_v4 = vld [vmem:[%s4462_s2] sm:$0xff]   ;;  %v39_v6 = vld [vmem:[%s4463_s0 + $0x8] sm:$0xff]  ;;  %v3597_v9 = vshrl.u32 %v49_v8, 7  ;;  %v3308_v29 = vld [vmem:[%s4465_s3 + $0xb0] ss:$12 sps:$4 sm:$0xff]   ;;  %368 = vmatprep.mubr.bf16.mxu1 %v3530_v40  ;;  %s3531_s2 = smov 64  }
   0x3   :  { %2959 = vmatprep.subr.bf16.mxu0 %v3528_v0  ;;  %v38_v5 = vld [vmem:[%s4463_s0] sm:$0xff]  ;;  %v3305_v27 = vld [vmem:[%s4465_s3 + $0xac] ss:$12 sps:$4 sm:$0xff]   ;;  %v3307_v28 = vld [vmem:[%s4465_s3 + $0xa8] ss:$12 sps:$4 sm:$0xff]   ;;  %s3532_s0 = smov 32  }
   0x4   :  { %v40_v7 = vpack.c.bf16 %v39_v6, %v38_v5  ;;  %v3600_v10 = vsub.s32 0, %v3597_v9  ;;  %v3605_v11 = vld [vmem:[%s4464_s5] sm:$0xff]  ;;  %336 = vmatprep.subr.bf16.mxu1 %v3305_v27  ;;  %v3311_v31 = vld [vmem:[%s4465_s3 + $0x90] ss:$12 sps:$4 sm:$0xff]   ;;  %v3320_v38 = vld [vmem:[%s4465_s3 + $0x68] ss:$12 sps:$4 sm:$0xff]  }
   0x5   :  { %337 = vmatpush1.bf16.msra.mxu1 %v3307_v28  ;;  %v3309_v30 = vld [vmem:[%s4465_s3 + $0x94] ss:$12 sps:$4 sm:$0xff]   ;;  %v3312_v32 = vld [vmem:[%s4465_s3 + $0x98] ss:$12 sps:$4 sm:$0xff]   ;;  %v3313_v33 = vld [vmem:[%s4465_s3 + $0x7c] ss:$12 sps:$4 sm:$0xff]  }
   0x6   :  { %2960 = vmatpush3.bf16.msra.mxu0 %v3302_v2  ;;  %v52_v12 = vrot.slane %v3605_v11, %v3600_v10  ;;  %338 = vmatprep.subr.bf16.mxu1 %v3309_v30  ;;  %v3315_v34 = vld [vmem:[%s4465_s3 + $0x78] ss:$12 sps:$4 sm:$0xff]   ;;  %v3316_v35 = vld [vmem:[%s4465_s3 + $0x80] ss:$12 sps:$4 sm:$0xff]   ;;  %v3323_v41 = vld [vmem:[%s4465_s3 + $0x48] ss:$12 sps:$4 sm:$0xff]  }
   0x7   :  { %2961 = vmatprep.subr.bf16.mxu0 %v3528_v0  ;;  %v3317_v36 = vld [vmem:[%s4465_s3 + $0x64] ss:$12 sps:$4 sm:$0xff]   ;;  %v3319_v37 = vld [vmem:[%s4465_s3 + $0x60] ss:$12 sps:$4 sm:$0xff]   ;;  %v3329_v46 = vld [vmem:[%s4465_s3 + $0x1c] ss:$12 sps:$4 sm:$0xff]  }
   0x8   :  { %v3321_v39 = vld [vmem:[%s4465_s3 + $0x4c] ss:$12 sps:$4 sm:$0xff]   ;;  %v3324_v42 = vld [vmem:[%s4465_s3 + $0x50] ss:$12 sps:$4 sm:$0xff]   ;;  %v3325_v43 = vld [vmem:[%s4465_s3 + $0x34] ss:$12 sps:$4 sm:$0xff]  }
   0x9   :  { %339 = vmatpush1.bf16.msra.mxu1 %v3311_v31  ;;  %v3327_v44 = vld [vmem:[%s4465_s3 + $0x30] ss:$12 sps:$4 sm:$0xff]   ;;  %v3328_v45 = vld [vmem:[%s4465_s3 + $0x38] ss:$12 sps:$4 sm:$0xff]   ;;  %v3332_v48 = vld [vmem:[%s4465_s3 + $0x20] ss:$12 sps:$4 sm:$0xff]  }
   0xa   :  { %2962 = vmatpush3.bf16.msra.mxu0 %v3303_v3  ;;  %340 = vmatprep.subr.bf16.mxu1 %v3313_v33  ;;  %v3331_v47 = vld [vmem:[%s4465_s3 + $0x18] ss:$12 sps:$4 sm:$0xff]   ;;  %v3335_v50 = vld [vmem:[%s4465_s3] ss:$12 sps:$4 sm:$0xff]   ;;  %v3336_v51 = vld [vmem:[%s4465_s3 + $0x8] ss:$12 sps:$4 sm:$0xff]  }
   0xb   :  { %2963 = vmatprep.subr.bf16.mxu0 %v3528_v0  ;;  %v3333_v49 = vld [vmem:[%s4465_s3 + $0x4] ss:$12 sps:$4 sm:$0xff]   ;;  %v3698_v58 = vsub.s32 1, %v3597_v9  ;;  %v3703_v60 = vsub.s32 2, %v3597_v9  ;;  %vm2157_vm4 = vcmask 1041408   ;;  %vm2159_vm5 = vcmask 1043456  }
   0xc   :  { %vm2161_vm6 = vcmask 1045504  }
   0xd   :  { %341 = vmatpush1.bf16.msra.mxu1 %v3315_v34  ;;  %v148_v59 = vrot.slane %v3605_v11, %v3698_v58  ;;  %v154_v1 = vrot.slane %v3605_v11, %v3703_v60 }
   0xe   :  { %2964 = vmatpush3.bf16.msra.mxu0 %v3304_v4  ;;  %342 = vmatprep.subr.bf16.mxu1 %v3317_v36 }
   0xf   :  { %2969 = vmatprep.subr.bf16.mxu0 %v3528_v0 }
  0x11   :  { %2966 = vmatmul.mubr.msk.bf16.vlgmr.msra.gmra.mxu0 %vm77_vm1, %v40_v7  ;;  %343 = vmatpush1.bf16.msra.mxu1 %v3319_v37 }
  0x12   :  { %2985 = vmatprep.mubr.msk.bf16.mxu0 %vm3529_vm0, %v3528_v0  ;;  %2970 = vmatpush3.bf16.msra.mxu0 %v3308_v29 }
  0x13   :  { %2971 = vmatprep.subr.bf16.mxu0 %v3528_v0  ;;  %344 = vmatprep.subr.bf16.mxu1 %v3321_v39 }
  0x15   :  { %345 = vmatpush1.bf16.msra.mxu1 %v3323_v41 }
  0x16   :  { %2972 = vmatpush3.bf16.msra.mxu0 %v3312_v32  ;;  %346 = vmatprep.subr.bf16.mxu1 %v3325_v43 }
  0x17   :  { %2973 = vmatprep.subr.bf16.mxu0 %v3528_v0 }
  0x19   :  { %347 = vmatpush1.bf16.msra.mxu1 %v3327_v44 }
  0x1a   :  { %2974 = vmatpush3.bf16.msra.mxu0 %v3316_v35  ;;  %348 = vmatprep.subr.bf16.mxu1 %v3329_v46 }
  0x1b   :  { %2975 = vmatprep.subr.bf16.mxu0 %v3528_v0 }
  0x1d   :  { %349 = vmatpush1.bf16.msra.mxu1 %v3331_v47 }
  0x1e   :  { %2976 = vmatpush3.bf16.msra.mxu0 %v3320_v38  ;;  %350 = vmatprep.subr.bf16.mxu1 %v3333_v49 }
  0x1f   :  { %2977 = vmatprep.subr.bf16.mxu0 %v3528_v0 }
  0x21   :  { %351 = vmatpush1.bf16.msra.mxu1 %v3335_v50 }
  0x22   :  { %2978 = vmatpush3.bf16.msra.mxu0 %v3324_v42 }
  0x23   :  { %2979 = vmatprep.subr.bf16.mxu0 %v3528_v0 }
  0x26   :  { %2980 = vmatpush3.bf16.msra.mxu0 %v3328_v45 }
  0x27   :  { %2981 = vmatprep.subr.bf16.mxu0 %v3528_v0 }
  0x2a   :  { %2982 = vmatpush3.bf16.msra.mxu0 %v3332_v48 }
  0x2b   :  { %2983 = vmatprep.subr.bf16.mxu0 %v3528_v0 }
  0x2e   :  { %2984 = vmatpush3.bf16.msra.mxu0 %v3336_v51 }
  0xd1   :  { %v115_v13 = vpop.f32.mrf.mxu0 }
  0xd2   :  { %v116_v14 = vadd.f32 %v115_v13, %v52_v12  ;;  %v3712_v13 = vld [vmem:[%s4464_s5 + $0x8] sm:$0xff] }
  0xd3   :  { %v2967_v15 = vpop.f32.mrf.mxu0  ;;  %v423_v11 = vrot.slane %v3712_v13, %v3600_v10 }
  0xd4   :  { %122 = vadd.xlane.f32.xlu0 %v116_v14 }
  0xd5   :  { %v118_v16 = vpop.f32.mrf.mxu0 }
  0xd6   :  { %v119_v17 = vadd.f32 %v118_v16, %v52_v12  ;;  %v435_v16 = vrot.slane %v3712_v13, %v3703_v60 }
  0xd7   :  { %v2968_v18 = vpop.f32.mrf.mxu0 }
  0xd8   :  { %124 = vadd.xlane.f32.xlu0 %v119_v17  ;;  %v429_v18 = vrot.slane %v3712_v13, %v3698_v58 }
 0x15d   :  { %v123_v19 = vpop.xlane.xlu0 %122 }
 0x15e   :  { %v127_v20 = vmul.f32 0.0078125, %v123_v19 }
 0x160   :  { %v3609_v21 = vsub.f32 %v116_v14, %v127_v20 }
 0x161   :  { %v125_v22 = vpop.xlane.xlu0 %124 }
 0x162   :  { %v128_v23 = vmul.f32 0.0078125, %v125_v22  ;;  %v131_v24 = vmul.f32 %v3609_v21, %v3609_v21 }
 0x164   :  { %133 = vadd.xlane.f32.xlu1 %v131_v24  ;;  %v3613_v25 = vsub.f32 %v119_v17, %v128_v23 }
 0x166   :  { %v132_v26 = vmul.f32 %v3613_v25, %v3613_v25 }
 0x168   :  { %135 = vadd.xlane.f32.xlu1 %v132_v26 }
 0x1ed   :  { %v134_v52 = vpop.xlane.xlu1 %133 }
 0x1ee   :  { %v137_v53 = vmul.f32 0.0078125, %v134_v52 }
 0x1f0   :  { %v139_v54 = vadd.f32 1e-05, %v137_v53 }
 0x1f1   :  { %v136_v55 = vpop.xlane.xlu1 %135 }
 0x1f2   :  { %3433 = vrsqrt.f32 %v139_v54  ;;  %v138_v56 = vmul.f32 0.0078125, %v136_v55 }
 0x1f4   :  { %v140_v57 = vadd.f32 1e-05, %v138_v56 }
 0x1f6   :  { %3435 = vrsqrt.f32 %v140_v57 }
 0x1ff   :  { %v3434_v61 = vpop.eup %3433 }
 0x200   :  { %v143_v62 = vmul.f32 %v3434_v61, %v3609_v21 }
 0x202   :  { %v149_v63 = vmul.f32 %v148_v59, %v143_v62 }
 0x203   :  { %v3436_v2 = vpop.eup %3435 }
 0x204   :  { %v144_v3 = vmul.f32 %v3436_v2, %v3613_v25  ;;  %v155_v5 = vadd.f32 %v154_v1, %v149_v63 }
 0x206   :  { %v150_v4 = vmul.f32 %v148_v59, %v144_v3  ;;  %v157_v7 = vmax.f32 %v155_v5, 0.0 }
 0x208   :  { %v156_v6 = vadd.f32 %v154_v1, %v150_v4  ;;  %v3779_v1 = vld [vmem:[%s4466_s1 + $0x10] sm:$0xff]  ;;  %v3784_v4 = vld [vmem:[%s4466_s1] sm:$0xff] }
 0x20a   :  { %v158_v8 = vmax.f32 %v156_v6, 0.0 }
 0x20c   :  { %v207_v12 = vpack.c.bf16 %v158_v8, %v157_v7 }
 0x20e   :  { %369 = vmatmul.mubr.bf16.vlgmr.msra.gmra.mxu1 %v207_v12  ;;  %2986 = vmatmul.mubr.bf16.vlgmr.msra.gmra.mxu0 %v207_v12 }
 0x2ce   :  { %v370_v14 = vpop.f32.mrf.mxu1  ;;  %v413_v15 = vpop.f32.mrf.mxu0 }
 0x2cf   :  { %v3720_v22 = vadd.f32 %v423_v11, %v370_v14  ;;  %v436_v23 = vadd.f32 %v435_v16, %v413_v15 }
 0x2d0   :  { %v372_v17 = vpop.f32.mrf.mxu1  ;;  %v2987_v19 = vpop.f32.mrf.mxu0 }
 0x2d1   :  { %v430_v26 = vadd.f32 %v429_v18, %v372_v17 }
 0x2d2   :  { %v374_v20 = vpop.f32.mrf.mxu1  ;;  %v416_v21 = vpop.f32.mrf.mxu0 }
 0x2d3   :  { %v3722_v24 = vadd.f32 %v423_v11, %v374_v20  ;;  %v437_v25 = vadd.f32 %v435_v16, %v416_v21  ;;  %v3792_v11 = vld [vmem:[%s4466_s1 + $0x8] sm:$0xff] }
 0x2d4   :  { %v376_v27 = vpop.f32.mrf.mxu1  ;;  %v2988_v28 = vpop.f32.mrf.mxu0 }
 0x2d5   :  { %v431_v29 = vadd.f32 %v429_v18, %v376_v27  ;;  %v498_v30 = vpack.c.bf16 %v3722_v24, %v3720_v22  ;;  %v3726_v31 = vpack.i.bf16 %v437_v25, %v436_v23  ;;  %v3728_v32 = vpack.c.bf16 %v437_v25, %v436_v23  ;;  %v3798_v18 = vld [vmem:[%s4466_s1 + $0x18] sm:$0xff]  ;;  %v3805_v25 = vld [vmem:[%s4466_s1 + $0x20] sm:$0xff] }
 0x2d7   :  { %2997 = vmatprep.mubr.msk.bf16.mxu1 %vm506_vm2, %v498_v30  ;;  %v3216_v33 = vpack.i.bf16 %v431_v29, %v430_v26  ;;  %v502_v34 = vpack.c.bf16 %v431_v29, %v430_v26  ;;  %v3811_v30 = vld [vmem:[%s4466_s1 + $0x30] sm:$0xff] }
 0x2d9   :  { %3217 = vrot.lane.b32.xlu1 %v3216_v33, %s3531_s2  ;;  %3212 = vrot.lane.b32.xlu0 %v3216_v33, %s3532_s0  ;;  %v520_v53 = vsel %vm506_vm2, %v502_v34, 0 }
 0x2dd   :  { %3222 = vrot.lane.b32.xlu1 %v3216_v33, %s3533_s9  ;;  %442 = vrot.lane.b32.xlu0 %v3722_v24, %s3533_s9 }
 0x2e1   :  { %440 = vrot.lane.b32.xlu1 %v3720_v22, %s3533_s9  ;;  %448 = vrot.lane.b32.xlu0 %v3722_v24, %s3531_s2 }
 0x2e5   :  { %446 = vrot.lane.b32.xlu1 %v3720_v22, %s3531_s2  ;;  %454 = vrot.lane.b32.xlu0 %v3722_v24, %s3532_s0 }
 0x2e9   :  { %452 = vrot.lane.b32.xlu1 %v3720_v22, %s3532_s0 }
 0x34b   :  { %v3218_v35 = vpop.permute.xlu1 %3217  ;;  %v3213_v36 = vpop.permute.xlu0 %3212 }
 0x34c   :  { %v3220_v37 = vunpack.i.h.bf16 %v3218_v35  ;;  %v3219_v38 = vunpack.i.l.bf16 %v3218_v35  ;;  %v3215_v39 = vunpack.i.h.bf16 %v3213_v36  ;;  %v3214_v41 = vunpack.i.l.bf16 %v3213_v36  ;;  %v3818_v36 = vld [vmem:[%s4466_s1 + $0x28] sm:$0xff] }
 0x34e   :  { %v505_v42 = vpack.c.bf16 %v3215_v39, %v3214_v41  ;;  %v504_v43 = vpack.c.bf16 %v3220_v37, %v3219_v38 }
 0x34f   :  { %v3223_v45 = vpop.permute.xlu1 %3222  ;;  %v3755_v52 = vpop.permute.xlu0 %442 }
 0x350   :  { %3197 = vmatprep.subr.msk.bf16.mxu1 %vm506_vm2, %v505_v42  ;;  %v529_v44 = vsel %vm506_vm2, %v505_v42, 0  ;;  %v3225_v46 = vunpack.i.h.bf16 %v3223_v45  ;;  %v3224_v47 = vunpack.i.l.bf16 %v3223_v45  ;;  %v526_v49 = vsel %vm506_vm2, %v504_v43, 0  ;;  %v3825_v42 = vld [vmem:[%s4466_s1 + $0x38] sm:$0xff] }
 0x351   :  { %2990 = vmatpush3.bf16.xpose.msra.mxu1 %v529_v44 }
 0x352   :  { %3198 = vmatprep.subr.msk.bf16.mxu1 %vm506_vm2, %v504_v43  ;;  %v503_v48 = vpack.c.bf16 %v3225_v46, %v3224_v47 }
 0x353   :  { %v3753_v51 = vpop.permute.xlu1 %440  ;;  %v3762_v56 = vpop.permute.xlu0 %448 }
 0x354   :  { %v523_v50 = vsel %vm506_vm2, %v503_v48, 0  ;;  %v499_v55 = vpack.c.bf16 %v3755_v52, %v3753_v51 }
 0x357   :  { %v3758_v54 = vpop.permute.xlu1 %446  ;;  %v3770_v61 = vpop.permute.xlu0 %454 }
 0x358   :  { %v500_v57 = vpack.c.bf16 %v3762_v56, %v3758_v54 }
 0x359   :  { %2992 = vmatpush3.bf16.xpose.msra.mxu1 %v526_v49 }
 0x35a   :  { %3199 = vmatprep.subr.msk.bf16.mxu1 %vm506_vm2, %v503_v48 }
 0x35b   :  { %v3768_v59 = vpop.permute.xlu1 %452 }
 0x35c   :  { %v501_v62 = vpack.c.bf16 %v3770_v61, %v3768_v59 }
 0x361   :  { %2994 = vmatpush3.bf16.xpose.msra.mxu1 %v523_v50 }
 0x362   :  { %3200 = vmatprep.subr.msk.bf16.mxu1 %vm506_vm2, %v502_v34 }
 0x369   :  { %2996 = vmatpush3.bf16.xpose.msra.mxu1 %v520_v53 }
 0x370   :  { %2998 = vmatmul.mubr.msk.bf16.vlgmr.msra.gmra.mxu1 %vm506_vm2, %v499_v55 }
 0x371   :  { %3001 = vmatprep.mubr.msk.bf16.mxu1 %vm506_vm2, %v500_v57 }
 0x378   :  { %3002 = vmatmul.mubr.msk.bf16.gmra.mxu1 %vm506_vm2, %v501_v62 }
 0x379   :  { %1201 = vmatprep.mubr.bf16.mxu1 %v3530_v40 }
 0x430   :  { %v2999_v63 = vpop.f32.mrf.mxu1 }
 0x431   :  { %v598_v2 = vmul.f32 0.17677669, %v2999_v63 }
 0x432   :  { %v565_v3 = vpop.f32.mrf.mxu1 }
 0x433   :  { %v596_v5 = vmul.f32 0.17677669, %v565_v3  ;;  %v606_v6 = vadd.f32 %v598_v2, %v3779_v1 }
 0x434   :  { %v3000_v7 = vpop.f32.mrf.mxu1 }
 0x435   :  { %v618_v8 = vsel %vm77_vm1, %v606_v6, -inf  ;;  %v604_v12 = vadd.f32 %v596_v5, %v3784_v4  ;;  %v599_v14 = vmul.f32 0.17677669, %v3000_v7 }
 0x436   :  { %619 = vmax.xlane.f32.xlu0 %v618_v8  ;;  %v568_v15 = vpop.f32.mrf.mxu1 }
 0x437   :  { %v597_v16 = vmul.f32 0.17677669, %v568_v15  ;;  %v612_v17 = vsel %vm77_vm1, %v604_v12, -inf  ;;  %v607_v23 = vadd.f32 %v599_v14, %v3798_v18 }
 0x438   :  { %613 = vmax.xlane.f32.xlu1 %v612_v17  ;;  %v3003_v19 = vpop.f32.mrf.mxu1 }
 0x439   :  { %v605_v20 = vadd.f32 %v597_v16, %v3792_v11  ;;  %v602_v26 = vmul.f32 0.17677669, %v3003_v19  ;;  %v621_v35 = vsel %vm77_vm1, %v607_v23, -inf }
 0x43a   :  { %v581_v21 = vpop.f32.mrf.mxu1 }
 0x43b   :  { %v600_v27 = vmul.f32 0.17677669, %v581_v21  ;;  %v615_v28 = vsel %vm77_vm1, %v605_v20, -inf  ;;  %v610_v41 = vadd.f32 %v602_v26, %v3811_v30 }
 0x43c   :  { %616 = vmax.xlane.f32.xlu0 %v615_v28  ;;  %v3004_v29 = vpop.f32.mrf.mxu1 }
 0x43d   :  { %v608_v33 = vadd.f32 %v600_v27, %v3805_v25  ;;  %v603_v37 = vmul.f32 0.17677669, %v3004_v29  ;;  %v630_v44 = vsel %vm77_vm1, %v610_v41, -inf }
 0x43e   :  { %v584_v34 = vpop.f32.mrf.mxu1 }
 0x43f   :  { %v601_v38 = vmul.f32 0.17677669, %v584_v34  ;;  %v624_v39 = vsel %vm77_vm1, %v608_v33, -inf  ;;  %v611_v46 = vadd.f32 %v603_v37, %v3825_v42 }
 0x440   :  { %622 = vmax.xlane.f32.xlu0 %v621_v35  ;;  %625 = vmax.xlane.f32.xlu1 %v624_v39 }
 0x441   :  { %v609_v43 = vadd.f32 %v601_v38, %v3818_v36  ;;  %v633_v47 = vsel %vm77_vm1, %v611_v46, -inf }
 0x443   :  { %v627_v45 = vsel %vm77_vm1, %v609_v43, -inf }
 0x444   :  { %631 = vmax.xlane.f32.xlu1 %v630_v44  ;;  %628 = vmax.xlane.f32.xlu0 %v627_v45 }
 0x448   :  { %634 = vmax.xlane.f32.xlu0 %v633_v47 }
 0x455   :  { %3227 = vrot.lane.b32.xlu1 %v3726_v31, %s3532_s0 }
 0x4bf   :  { %v620_v48 = vpop.xlane.xlu0 %619 }
 0x4c0   :  { %v638_v49 = vsub.f32 %v606_v6, %v620_v48 }
 0x4c1   :  { %v614_v50 = vpop.xlane.xlu1 %613 }
 0x4c2   :  { %v648_v53 = vmul.f32 1.442695, %v638_v49  ;;  %v636_v55 = vsub.f32 %v604_v12, %v614_v50 }
 0x4c4   :  { %3437 = vpow2.f32 %v648_v53  ;;  %v644_v57 = vmul.f32 1.442695, %v636_v55 }
 0x4c5   :  { %v617_v62 = vpop.xlane.xlu0 %616 }
 0x4c6   :  { %3439 = vpow2.f32 %v644_v57  ;;  %v637_v63 = vsub.f32 %v605_v20, %v617_v62 }
 0x4c8   :  { %v646_v7 = vmul.f32 1.442695, %v637_v63 }
 0x4c9   :  { %v623_v2 = vpop.xlane.xlu0 %622  ;;  %v626_v3 = vpop.xlane.xlu1 %625 }
 0x4ca   :  { %v639_v5 = vsub.f32 %v607_v23, %v623_v2  ;;  %v640_v14 = vsub.f32 %v608_v33, %v626_v3 }
 0x4cc   :  { %v650_v8 = vmul.f32 1.442695, %v639_v5  ;;  %v652_v6 = vmul.f32 1.442695, %v640_v14 }
 0x4cd   :  { %v632_v15 = vpop.xlane.xlu1 %631  ;;  %v629_v16 = vpop.xlane.xlu0 %628 }
 0x4ce   :  { %3441 = vpow2.f32 %v650_v8  ;;  %v642_v17 = vsub.f32 %v610_v41, %v632_v15  ;;  %v641_v21 = vsub.f32 %v609_v43, %v629_v16 }
 0x4cf   :  { %3443 = vpow2.f32 %v646_v7 }
 0x4d0   :  { %v656_v19 = vmul.f32 1.442695, %v642_v17  ;;  %v654_v34 = vmul.f32 1.442695, %v641_v21 }
 0x4d1   :  { %v3834_v12 = vpop.eup %3437  ;;  %v635_v26 = vpop.xlane.xlu0 %634 }
 0x4d2   :  { %v3228_v27 = vpop.permute.xlu1 %3227  ;;  %3445 = vpow2.f32 %v656_v19  ;;  %v643_v20 = vsub.f32 %v611_v46, %v635_v26  ;;  %v666_v23 = vsel %vm77_vm1, %v3834_v12, 0.0 }
 0x4d3   :  { %v3230_v28 = vunpack.i.h.bf16 %v3228_v27  ;;  %v3229_v29 = vunpack.i.l.bf16 %v3228_v27  ;;  %v3440_v33 = vpop.eup %3439  ;;  %3447 = vpow2.f32 %v652_v6  ;;  %667 = vadd.xlane.f32.xlu1 %v666_v23 }
 0x4d4   :  { %v658_v35 = vmul.f32 1.442695, %v643_v20  ;;  %v660_v38 = vsel %vm77_vm1, %v3440_v33, 0.0 }
 0x4d5   :  { %v707_v37 = vpack.c.bf16 %v3230_v28, %v3229_v29 }
 0x4d6   :  { %3449 = vpow2.f32 %v658_v35 }
 0x4d7   :  { %3005 = vmatprep.subr.bf16.mxu0 %v707_v37  ;;  %3451 = vpow2.f32 %v654_v34  ;;  %661 = vadd.xlane.f32.xlu1 %v660_v38 }
 0x4d8   :  { %3006 = vmatpush3.bf16.msra.mxu0 %v707_v37 }
 0x4db   :  { %v3442_v39 = vpop.eup %3441 }
 0x4dc   :  { %v669_v41 = vsel %vm77_vm1, %v3442_v39, 0.0  ;;  %v3444_v43 = vpop.eup %3443 }
 0x4dd   :  { %670 = vadd.xlane.f32.xlu0 %v669_v41  ;;  %v663_v45 = vsel %vm77_vm1, %v3444_v43, 0.0 }
 0x4df   :  { %v3840_v44 = vpop.eup %3445 }
 0x4e0   :  { %v678_v46 = vsel %vm77_vm1, %v3840_v44, 0.0  ;;  %v3448_v47 = vpop.eup %3447 }
 0x4e1   :  { %664 = vadd.xlane.f32.xlu0 %v663_v45  ;;  %679 = vadd.xlane.f32.xlu1 %v678_v46  ;;  %v672_v50 = vsel %vm77_vm1, %v3448_v47, 0.0 }
 0x4e3   :  { %v3450_v48 = vpop.eup %3449 }
 0x4e4   :  { %v681_v49 = vsel %vm77_vm1, %v3450_v48, 0.0  ;;  %v3452_v53 = vpop.eup %3451 }
 0x4e5   :  { %682 = vadd.xlane.f32.xlu0 %v681_v49  ;;  %673 = vadd.xlane.f32.xlu1 %v672_v50  ;;  %v675_v55 = vsel %vm77_vm1, %v3452_v53, 0.0 }
 0x4e9   :  { %676 = vadd.xlane.f32.xlu0 %v675_v55 }
 0x4f6   :  { %3237 = vrot.lane.b32.xlu1 %v3726_v31, %s3533_s9 }
 0x4ff   :  { %3232 = vrot.lane.b32.xlu0 %v3726_v31, %s3531_s2 }
 0x55c   :  { %v668_v57 = vpop.xlane.xlu1 %667 }
 0x560   :  { %v662_v62 = vpop.xlane.xlu1 %661 }
 0x561   :  { %3453 = vrcp.f32 %v662_v62 }
 0x566   :  { %v671_v63 = vpop.xlane.xlu0 %670 }
 0x56a   :  { %v665_v2 = vpop.xlane.xlu0 %664  ;;  %v680_v3 = vpop.xlane.xlu1 %679 }
 0x56b   :  { %3455 = vrcp.f32 %v665_v2 }
 0x56c   :  { %3457 = vrcp.f32 %v671_v63 }
 0x56d   :  { %3459 = vrcp.f32 %v668_v57 }
 0x56e   :  { %v683_v5 = vpop.xlane.xlu0 %682  ;;  %v674_v7 = vpop.xlane.xlu1 %673 }
 0x56f   :  { %v3454_v15 = vpop.eup %3453 }
 0x570   :  { %v692_v27 = vmul.f32 %v3454_v15, %v3440_v33 }
 0x572   :  { %v677_v8 = vpop.xlane.xlu0 %676  ;;  %v3238_v14 = vpop.permute.xlu1 %3237 }
 0x573   :  { %3461 = vrcp.f32 %v677_v8  ;;  %v3240_v17 = vunpack.i.h.bf16 %v3238_v14  ;;  %v3239_v6 = vunpack.i.l.bf16 %v3238_v14 }
 0x574   :  { %3463 = vrcp.f32 %v674_v7 }
 0x575   :  { %3465 = vrcp.f32 %v683_v5  ;;  %v705_v28 = vpack.c.bf16 %v3240_v17, %v3239_v6 }
 0x576   :  { %v3233_v16 = vpop.permute.xlu0 %3232  ;;  %3467 = vrcp.f32 %v680_v3 }
 0x577   :  { %v3235_v31 = vunpack.i.h.bf16 %v3233_v16  ;;  %v3234_v19 = vunpack.i.l.bf16 %v3233_v16 }
 0x578   :  { %v3456_v21 = vpop.eup %3455 }
 0x579   :  { %v706_v26 = vpack.c.bf16 %v3235_v31, %v3234_v19  ;;  %v693_v20 = vmul.f32 %v3456_v21, %v3444_v43  ;;  %v3458_v23 = vpop.eup %3457 }
 0x57a   :  { %v3460_v34 = vpop.eup %3459  ;;  %v695_v38 = vmul.f32 %v3458_v23, %v3442_v39 }
 0x57b   :  { %3007 = vmatprep.subr.bf16.mxu0 %v706_v26  ;;  %v700_v29 = vpack.c.bf16 %v693_v20, %v692_v27  ;;  %v694_v33 = vmul.f32 %v3460_v34, %v3834_v12 }
 0x57c   :  { %3008 = vmatpush3.bf16.msra.mxu0 %v706_v26 }
 0x57d   :  { %3009 = vmatprep.subr.bf16.mxu0 %v705_v28  ;;  %3013 = vmatprep.mubr.msk.bf16.mxu0 %vm77_vm1, %v700_v29  ;;  %v701_v45 = vpack.c.bf16 %v695_v38, %v694_v33  ;;  %v3339_v38 = vld [vmem:[%s4467_s4 + $0x28] sm:$0xff]   ;;  %v3341_v33 = vld [vmem:[%s4467_s4 + $0x18] sm:$0xff]  }
 0x580   :  { %v3462_v35 = vpop.eup %3461  ;;  %3010 = vmatpush3.bf16.msra.mxu0 %v705_v28 }
 0x581   :  { %v3464_v37 = vpop.eup %3463  ;;  %3011 = vmatprep.subr.bf16.mxu0 %v3728_v32  ;;  %v697_v41 = vmul.f32 %v3462_v35, %v3452_v53 }
 0x582   :  { %v696_v43 = vmul.f32 %v3464_v37, %v3448_v47  ;;  %v3466_v46 = vpop.eup %3465  ;;  %v3338_v37 = vld [vmem:[%s4467_s4 + $0x30] sm:$0xff]  }
 0x583   :  { %v3468_v50 = vpop.eup %3467  ;;  %v699_v55 = vmul.f32 %v3466_v46, %v3450_v48  ;;  %v3344_v46 = vld [vmem:[%s4467_s4] sm:$0xff]  }
 0x584   :  { %3012 = vmatpush3.bf16.msra.mxu0 %v3728_v32  ;;  %v702_v49 = vpack.c.bf16 %v697_v41, %v696_v43  ;;  %v698_v57 = vmul.f32 %v3468_v50, %v3840_v44  ;;  %v3340_v41 = vld [vmem:[%s4467_s4 + $0x20] sm:$0xff]   ;;  %v3342_v43 = vld [vmem:[%s4467_s4 + $0x10] sm:$0xff]  }
 0x585   :  { %3021 = vmatprep.subr.bf16.mxu0 %v3528_v0 }
 0x586   :  { %v703_v39 = vpack.c.bf16 %v699_v55, %v698_v57 }
 0x587   :  { %3014 = vmatmul.mubr.msk.bf16.vlgmr.msra.gmra.mxu0 %vm77_vm1, %v701_v45  ;;  %v3343_v45 = vld [vmem:[%s4467_s4 + $0x8] sm:$0xff]  }
 0x588   :  { %3017 = vmatprep.mubr.msk.bf16.mxu0 %vm77_vm1, %v702_v49 }
 0x58f   :  { %3018 = vmatmul.mubr.msk.bf16.gmra.mxu0 %vm77_vm1, %v703_v39 }
 0x590   :  { %3037 = vmatprep.mubr.msk.bf16.mxu0 %vm3529_vm0, %v3528_v0 }
 0x647   :  { %v3015_v32 = vpop.f32.mrf.mxu0 }
 0x648   :  { %v787_v12 = vadd.f32 %v3015_v32, %v3753_v51 }
 0x649   :  { %v754_v47 = vpop.f32.mrf.mxu0 }
 0x64a   :  { %795 = vrot.lane.b32.xlu1 %v787_v12, %s3532_s0  ;;  %v3916_v12 = vsub.s32 4, %v3597_v9 }
 0x64b   :  { %v3016_v53 = vpop.f32.mrf.mxu0 }
 0x64c   :  { %v788_v62 = vadd.f32 %v3016_v53, %v3755_v52 }
 0x64d   :  { %v757_v63 = vpop.f32.mrf.mxu0 }
 0x64e   :  { %797 = vrot.lane.b32.xlu1 %v788_v62, %s3532_s0  ;;  %v786_v6 = vadd.f32 %v757_v63, %v3722_v24  ;;  %v849_v62 = vrot.slane %v3712_v13, %v3916_v12  ;;  %v3921_v63 = vsub.s32 5, %v3597_v9 }
 0x64f   :  { %v3019_v48 = vpop.f32.mrf.mxu0 }
 0x650   :  { %v791_v7 = vadd.f32 %v3019_v48, %v3768_v59 }
 0x651   :  { %v770_v44 = vpop.f32.mrf.mxu0 }
 0x652   :  { %v789_v2 = vadd.f32 %v770_v44, %v3758_v54  ;;  %v785_v54 = vadd.f32 %v754_v47, %v3720_v22  ;;  %v3337_v22 = vld [vmem:[%s4467_s4 + $0x38] sm:$0xff]  }
 0x653   :  { %v3020_v3 = vpop.f32.mrf.mxu0  ;;  %3022 = vmatpush3.bf16.msra.mxu0 %v3337_v22  ;;  %v3348_v22 = vld [vmem:[%s4465_s3 + $0x170] ss:$12 sps:$4 sm:$0xff]  }
 0x654   :  { %803 = vrot.lane.b32.xlu0 %v789_v2, %s3531_s2  ;;  %v792_v52 = vadd.f32 %v3020_v3, %v3770_v61  ;;  %3023 = vmatprep.subr.bf16.mxu0 %v3528_v0  ;;  %v855_v3 = vrot.slane %v3712_v13, %v3921_v63 }
 0x655   :  { %v773_v5 = vpop.f32.mrf.mxu0 }
 0x656   :  { %v790_v51 = vadd.f32 %v773_v5, %v3762_v56 }
 0x657   :  { %3024 = vmatpush3.bf16.msra.mxu0 %v3338_v37  ;;  %v3351_v37 = vld [vmem:[%s4465_s3 + $0x154] ss:$12 sps:$4 sm:$0xff]  }
 0x658   :  { %811 = vrot.lane.b32.xlu0 %v791_v7, %s3533_s9  ;;  %805 = vrot.lane.b32.xlu1 %v790_v51, %s3531_s2 }
 0x659   :  { %3025 = vmatprep.subr.bf16.mxu0 %v3528_v0 }
 0x65b   :  { %3026 = vmatpush3.bf16.msra.mxu0 %v3339_v38  ;;  %v3349_v38 = vld [vmem:[%s4465_s3 + $0x150] ss:$12 sps:$4 sm:$0xff]  }
 0x65c   :  { %813 = vrot.lane.b32.xlu1 %v792_v52, %s3533_s9  ;;  %3027 = vmatprep.subr.bf16.mxu0 %v3528_v0 }
 0x65f   :  { %3028 = vmatpush3.bf16.msra.mxu0 %v3340_v41  ;;  %v3352_v41 = vld [vmem:[%s4465_s3 + $0x158] ss:$12 sps:$4 sm:$0xff]  }
 0x660   :  { %3029 = vmatprep.subr.bf16.mxu0 %v3528_v0 }
 0x663   :  { %3030 = vmatpush3.bf16.msra.mxu0 %v3341_v33  ;;  %v3355_v33 = vld [vmem:[%s4465_s3 + $0x13c] ss:$12 sps:$4 sm:$0xff]  }
 0x664   :  { %3031 = vmatprep.subr.bf16.mxu0 %v3528_v0 }
 0x667   :  { %3032 = vmatpush3.bf16.msra.mxu0 %v3342_v43  ;;  %v3353_v43 = vld [vmem:[%s4465_s3 + $0x138] ss:$12 sps:$4 sm:$0xff]  }
 0x668   :  { %3033 = vmatprep.subr.bf16.mxu0 %v3528_v0 }
 0x66b   :  { %3034 = vmatpush3.bf16.msra.mxu0 %v3343_v45  ;;  %v3356_v45 = vld [vmem:[%s4465_s3 + $0x140] ss:$12 sps:$4 sm:$0xff]  }
 0x66c   :  { %3035 = vmatprep.subr.bf16.mxu0 %v3528_v0 }
 0x66f   :  { %3036 = vmatpush3.bf16.msra.mxu0 %v3344_v46  ;;  %v3359_v46 = vld [vmem:[%s4465_s3 + $0x124] ss:$12 sps:$4 sm:$0xff]  }
 0x670   :  { %3041 = vmatprep.subr.bf16.mxu0 %v3528_v0 }
 0x6bc   :  { %v796_v8 = vpop.permute.xlu1 %795 }
 0x6bd   :  { %v817_v16 = vsel %vm506_vm2, %v785_v54, %v796_v8  ;;  %v3928_v8 = vsub.s32 3, %v3597_v9 }
 0x6c0   :  { %v798_v14 = vpop.permute.xlu1 %797 }
 0x6c1   :  { %v818_v61 = vsel %vm506_vm2, %v786_v6, %v798_v14  ;;  %v862_v14 = vrot.slane %v3712_v13, %v3928_v8 }
 0x6c6   :  { %v804_v15 = vpop.permute.xlu0 %803 }
 0x6c7   :  { %v819_v59 = vsel %vm77_vm1, %v817_v16, %v804_v15 }
 0x6ca   :  { %v812_v17 = vpop.permute.xlu0 %811  ;;  %v806_v56 = vpop.permute.xlu1 %805 }
 0x6cb   :  { %v822_v31 = vsel %vm821_vm3, %v819_v59, %v812_v17  ;;  %v820_v19 = vsel %vm77_vm1, %v818_v61, %v806_v56 }
 0x6cc   :  { %824 = vadd.xlane.f32.xlu0 %v822_v31 }
 0x6ce   :  { %v814_v21 = vpop.permute.xlu1 %813 }
 0x6cf   :  { %v823_v26 = vsel %vm821_vm3, %v820_v19, %v814_v21  ;;  %v3345_v21 = vld [vmem:[%s4465_s3 + $0x168] ss:$12 sps:$4 sm:$0xff]  }
 0x6d0   :  { %826 = vadd.xlane.f32.xlu1 %v823_v26 }
 0x755   :  { %v825_v27 = vpop.xlane.xlu0 %824 }
 0x756   :  { %v828_v24 = vmul.f32 0.0078125, %v825_v27 }
 0x758   :  { %v830_v20 = vsub.f32 %v822_v31, %v828_v24 }
 0x759   :  { %v827_v28 = vpop.xlane.xlu1 %826 }
 0x75a   :  { %v829_v29 = vmul.f32 0.0078125, %v827_v28  ;;  %v832_v23 = vmul.f32 %v830_v20, %v830_v20 }
 0x75c   :  { %v831_v34 = vsub.f32 %v823_v26, %v829_v29  ;;  %834 = vadd.xlane.f32.xlu0 %v832_v23  ;;  %v3347_v26 = vld [vmem:[%s4465_s3 + $0x16c] ss:$12 sps:$4 sm:$0xff]  }
 0x75d   :  { %1169 = vmatprep.subr.bf16.mxu1 %v3347_v26 }
 0x75e   :  { %v833_v35 = vmul.f32 %v831_v34, %v831_v34  ;;  %1170 = vmatpush1.bf16.msra.mxu1 %v3345_v21 }
 0x75f   :  { %1171 = vmatprep.subr.bf16.mxu1 %v3351_v37 }
 0x760   :  { %836 = vadd.xlane.f32.xlu0 %v833_v35 }
 0x762   :  { %1172 = vmatpush1.bf16.msra.mxu1 %v3349_v38 }
 0x763   :  { %1173 = vmatprep.subr.bf16.mxu1 %v3355_v33 }
 0x766   :  { %1174 = vmatpush1.bf16.msra.mxu1 %v3353_v43 }
 0x767   :  { %1175 = vmatprep.subr.bf16.mxu1 %v3359_v46 }
 0x7e5   :  { %v835_v49 = vpop.xlane.xlu0 %834 }
 0x7e6   :  { %v838_v50 = vmul.f32 0.0078125, %v835_v49  ;;  %v3357_v49 = vld [vmem:[%s4465_s3 + $0x120] ss:$12 sps:$4 sm:$0xff]  }
 0x7e7   :  { %1176 = vmatpush1.bf16.msra.mxu1 %v3357_v49 }
 0x7e8   :  { %v840_v55 = vadd.f32 1e-05, %v838_v50  ;;  %v3360_v50 = vld [vmem:[%s4465_s3 + $0x128] ss:$12 sps:$4 sm:$0xff]  }
 0x7e9   :  { %v837_v57 = vpop.xlane.xlu0 %836 }
 0x7ea   :  { %3469 = vrsqrt.f32 %v840_v55  ;;  %v839_v39 = vmul.f32 0.0078125, %v837_v57  ;;  %v3363_v55 = vld [vmem:[%s4465_s3 + $0x10c] ss:$12 sps:$4 sm:$0xff]   ;;  %v3361_v57 = vld [vmem:[%s4465_s3 + $0x108] ss:$12 sps:$4 sm:$0xff]  }
 0x7eb   :  { %1177 = vmatprep.subr.bf16.mxu1 %v3363_v55 }
 0x7ec   :  { %v841_v32 = vadd.f32 1e-05, %v839_v39  ;;  %v3364_v39 = vld [vmem:[%s4465_s3 + $0x110] ss:$12 sps:$4 sm:$0xff]   ;;  %1178 = vmatpush1.bf16.msra.mxu1 %v3361_v57 }
 0x7ee   :  { %3471 = vrsqrt.f32 %v841_v32  ;;  %v3367_v32 = vld [vmem:[%s4465_s3 + $0xf4] ss:$12 sps:$4 sm:$0xff]  }
 0x7ef   :  { %1179 = vmatprep.subr.bf16.mxu1 %v3367_v32 }
 0x7f7   :  { %v3470_v47 = vpop.eup %3469 }
 0x7f8   :  { %v844_v53 = vmul.f32 %v3470_v47, %v830_v20  ;;  %v3365_v47 = vld [vmem:[%s4465_s3 + $0xf0] ss:$12 sps:$4 sm:$0xff]  }
 0x7f9   :  { %1180 = vmatpush1.bf16.msra.mxu1 %v3365_v47 }
 0x7fa   :  { %v850_v2 = vmul.f32 %v849_v62, %v844_v53  ;;  %v3368_v53 = vld [vmem:[%s4465_s3 + $0xf8] ss:$12 sps:$4 sm:$0xff]  }
 0x7fb   :  { %v3472_v48 = vpop.eup %3471 }
 0x7fc   :  { %v845_v44 = vmul.f32 %v3472_v48, %v831_v34  ;;  %v856_v7 = vadd.f32 %v855_v3, %v850_v2  ;;  %v3369_v48 = vld [vmem:[%s4465_s3 + $0xd8] ss:$12 sps:$4 sm:$0xff]  }
 0x7fd   :  { %v3375_v2 = vld [vmem:[%s4465_s3 + $0xc4] ss:$12 sps:$4 sm:$0xff]  }
 0x7fe   :  { %v851_v5 = vmul.f32 %v849_v62, %v845_v44  ;;  %v3371_v62 = vld [vmem:[%s4465_s3 + $0xdc] ss:$12 sps:$4 sm:$0xff]   ;;  %v3372_v44 = vld [vmem:[%s4465_s3 + $0xe0] ss:$12 sps:$4 sm:$0xff]  }
 0x7ff   :  { %1181 = vmatprep.subr.bf16.mxu1 %v3371_v62 }
 0x800   :  { %v857_v51 = vadd.f32 %v855_v3, %v851_v5  ;;  %1182 = vmatpush1.bf16.msra.mxu1 %v3369_v48  ;;  %v3373_v3 = vld [vmem:[%s4465_s3 + $0xc0] ss:$12 sps:$4 sm:$0xff]   ;;  %v3376_v5 = vld [vmem:[%s4465_s3 + $0xc8] ss:$12 sps:$4 sm:$0xff]  }
 0x801   :  { %1183 = vmatprep.subr.bf16.mxu1 %v3375_v2 }
 0x802   :  { %v858_v52 = vpack.c.bf16 %v857_v51, %v856_v7 }
 0x804   :  { %3038 = vmatmul.mubr.bf16.vlgmr.msra.gmra.mxu0 %v858_v52  ;;  %1184 = vmatpush1.bf16.msra.mxu1 %v3373_v3 }
 0x805   :  { %3057 = vmatprep.mubr.msk.bf16.mxu0 %vm3529_vm0, %v3528_v0  ;;  %3042 = vmatpush3.bf16.msra.mxu0 %v3348_v22 }
 0x806   :  { %3043 = vmatprep.subr.bf16.mxu0 %v3528_v0 }
 0x809   :  { %3044 = vmatpush3.bf16.msra.mxu0 %v3352_v41 }
 0x80a   :  { %3045 = vmatprep.subr.bf16.mxu0 %v3528_v0 }
 0x80d   :  { %3046 = vmatpush3.bf16.msra.mxu0 %v3356_v45 }
 0x80e   :  { %3047 = vmatprep.subr.bf16.mxu0 %v3528_v0 }
 0x811   :  { %3048 = vmatpush3.bf16.msra.mxu0 %v3360_v50 }
 0x812   :  { %3049 = vmatprep.subr.bf16.mxu0 %v3528_v0 }
 0x815   :  { %3050 = vmatpush3.bf16.msra.mxu0 %v3364_v39 }
 0x816   :  { %3051 = vmatprep.subr.bf16.mxu0 %v3528_v0 }
 0x819   :  { %3052 = vmatpush3.bf16.msra.mxu0 %v3368_v53 }
 0x81a   :  { %3053 = vmatprep.subr.bf16.mxu0 %v3528_v0 }
 0x81d   :  { %3054 = vmatpush3.bf16.msra.mxu0 %v3372_v44 }
 0x81e   :  { %3055 = vmatprep.subr.bf16.mxu0 %v3528_v0 }
 0x821   :  { %3056 = vmatpush3.bf16.msra.mxu0 %v3376_v5 }
 0x8c4   :  { %v945_v15 = vpop.f32.mrf.mxu0 }
 0x8c5   :  { %v946_v54 = vadd.f32 %v945_v15, %v862_v14 }
 0x8c6   :  { %v3039_v16 = vpop.f32.mrf.mxu0 }
 0x8c7   :  { %v952_v59 = vmax.f32 %v946_v54, 0.0  ;;  %v4020_v16 = vsub.s32 6, %v3597_v9 }
 0x8c8   :  { %v948_v17 = vpop.f32.mrf.mxu0 }
 0x8c9   :  { %v949_v56 = vadd.f32 %v948_v17, %v862_v14  ;;  %v954_v6 = vadd.f32 %v952_v59, %v856_v7 }
 0x8ca   :  { %v3040_v31 = vpop.f32.mrf.mxu0 }
 0x8cb   :  { %v953_v61 = vmax.f32 %v949_v56, 0.0  ;;  %956 = vadd.xlane.f32.xlu0 %v954_v6  ;;  %v981_v56 = vrot.slane %v3712_v13, %v4020_v16 }
 0x8cd   :  { %v955_v19 = vadd.f32 %v953_v61, %v857_v51 }
 0x8cf   :  { %958 = vadd.xlane.f32.xlu1 %v955_v19 }
 0x954   :  { %v957_v27 = vpop.xlane.xlu0 %956 }
 0x955   :  { %v960_v24 = vmul.f32 0.0078125, %v957_v27 }
 0x957   :  { %v3942_v20 = vsub.f32 %v954_v6, %v960_v24  ;;  %v4026_v6 = vsub.s32 7, %v3597_v9 }
 0x958   :  { %v959_v28 = vpop.xlane.xlu1 %958 }
 0x959   :  { %v961_v29 = vmul.f32 0.0078125, %v959_v28  ;;  %v964_v23 = vmul.f32 %v3942_v20, %v3942_v20  ;;  %v987_v21 = vrot.slane %v3712_v13, %v4026_v6 }
 0x95b   :  { %v3946_v34 = vsub.f32 %v955_v19, %v961_v29  ;;  %966 = vadd.xlane.f32.xlu0 %v964_v23 }
 0x95d   :  { %v965_v35 = vmul.f32 %v3946_v34, %v3946_v34 }
 0x95f   :  { %968 = vadd.xlane.f32.xlu1 %v965_v35 }
 0x9e4   :  { %v967_v7 = vpop.xlane.xlu0 %966 }
 0x9e5   :  { %v970_v51 = vmul.f32 0.0078125, %v967_v7 }
 0x9e7   :  { %v972_v52 = vadd.f32 1e-05, %v970_v51 }
 0x9e8   :  { %v969_v14 = vpop.xlane.xlu1 %968 }
 0x9e9   :  { %3473 = vrsqrt.f32 %v972_v52  ;;  %v971_v15 = vmul.f32 0.0078125, %v969_v14 }
 0x9eb   :  { %v973_v54 = vadd.f32 1e-05, %v971_v15 }
 0x9ed   :  { %3475 = vrsqrt.f32 %v973_v54 }
 0x9f6   :  { %v3474_v59 = vpop.eup %3473 }
 0x9f7   :  { %v976_v17 = vmul.f32 %v3474_v59, %v3942_v20  ;;  %v4034_v20 = vld [vmem:[%s4464_s5 + $0x10] sm:$0xff] }
 0x9f8   :  { %v1256_v29 = vrot.slane %v4034_v20, %v3600_v10  ;;  %v1268_v23 = vrot.slane %v4034_v20, %v3703_v60 }
 0x9f9   :  { %v982_v19 = vmul.f32 %v981_v56, %v976_v17 }
 0x9fa   :  { %v3476_v31 = vpop.eup %3475 }
 0x9fb   :  { %v977_v61 = vmul.f32 %v3476_v31, %v3946_v34  ;;  %v988_v22 = vadd.f32 %v987_v21, %v982_v19  ;;  %v1262_v34 = vrot.slane %v4034_v20, %v3698_v58 }
 0x9fd   :  { %v983_v26 = vmul.f32 %v981_v56, %v977_v61 }
 0x9ff   :  { %v989_v27 = vadd.f32 %v987_v21, %v983_v26 }
 0xa01   :  { %v1040_v24 = vpack.c.bf16 %v989_v27, %v988_v22 }
 0xa03   :  { %1202 = vmatmul.mubr.bf16.vlgmr.msra.gmra.mxu1 %v1040_v24  ;;  %3058 = vmatmul.mubr.bf16.vlgmr.msra.gmra.mxu0 %v1040_v24 }
 0xac3   :  { %v1203_v9 = vpop.f32.mrf.mxu1  ;;  %v1246_v28 = vpop.f32.mrf.mxu0 }
 0xac4   :  { %v4042_v41 = vadd.f32 %v1256_v29, %v1203_v9  ;;  %v1269_v33 = vadd.f32 %v1268_v23, %v1246_v28 }
 0xac5   :  { %v1205_v13 = vpop.f32.mrf.mxu1  ;;  %v3059_v35 = vpop.f32.mrf.mxu0 }
 0xac6   :  { %v1263_v46 = vadd.f32 %v1262_v34, %v1205_v13 }
 0xac7   :  { %v1207_v37 = vpop.f32.mrf.mxu1  ;;  %v1249_v38 = vpop.f32.mrf.mxu0 }
 0xac8   :  { %v4044_v43 = vadd.f32 %v1256_v29, %v1207_v37  ;;  %v1270_v45 = vadd.f32 %v1268_v23, %v1249_v38 }
 0xac9   :  { %v1209_v49 = vpop.f32.mrf.mxu1  ;;  %v3060_v50 = vpop.f32.mrf.mxu0 }
 0xaca   :  { %v1264_v55 = vadd.f32 %v1262_v34, %v1209_v49  ;;  %v1331_v57 = vpack.c.bf16 %v4044_v43, %v4042_v41  ;;  %v4048_v39 = vpack.i.bf16 %v1270_v45, %v1269_v33  ;;  %v4050_v32 = vpack.c.bf16 %v1270_v45, %v1269_v33 }
 0xacc   :  { %3069 = vmatprep.mubr.msk.bf16.mxu1 %vm506_vm2, %v1331_v57  ;;  %v3246_v47 = vpack.i.bf16 %v1264_v55, %v1263_v46  ;;  %v1335_v53 = vpack.c.bf16 %v1264_v55, %v1263_v46 }
 0xace   :  { %3247 = vrot.lane.b32.xlu1 %v3246_v47, %s3531_s2  ;;  %3242 = vrot.lane.b32.xlu0 %v3246_v47, %s3532_s0  ;;  %v1352_v19 = vsel %vm506_vm2, %v1335_v53, 0 }
 0xad2   :  { %3252 = vrot.lane.b32.xlu1 %v3246_v47, %s3533_s9  ;;  %1275 = vrot.lane.b32.xlu0 %v4044_v43, %s3533_s9 }
 0xad6   :  { %1273 = vrot.lane.b32.xlu1 %v4042_v41, %s3533_s9  ;;  %1281 = vrot.lane.b32.xlu0 %v4044_v43, %s3531_s2 }
 0xada   :  { %1279 = vrot.lane.b32.xlu1 %v4042_v41, %s3531_s2  ;;  %1287 = vrot.lane.b32.xlu0 %v4044_v43, %s3532_s0 }
 0xade   :  { %1285 = vrot.lane.b32.xlu1 %v4042_v41, %s3532_s0 }
 0xb40   :  { %v3248_v62 = vpop.permute.xlu1 %3247  ;;  %v3243_v48 = vpop.permute.xlu0 %3242 }
 0xb41   :  { %v3250_v44 = vunpack.i.h.bf16 %v3248_v62  ;;  %v3249_v2 = vunpack.i.l.bf16 %v3248_v62  ;;  %v3245_v3 = vunpack.i.h.bf16 %v3243_v48  ;;  %v3244_v5 = vunpack.i.l.bf16 %v3243_v48 }
 0xb43   :  { %v1338_v7 = vpack.c.bf16 %v3245_v3, %v3244_v5  ;;  %v1337_v51 = vpack.c.bf16 %v3250_v44, %v3249_v2 }
 0xb44   :  { %v3253_v14 = vpop.permute.xlu1 %3252  ;;  %v4077_v61 = vpop.permute.xlu0 %1275 }
 0xb45   :  { %3201 = vmatprep.subr.msk.bf16.mxu1 %vm506_vm2, %v1338_v7  ;;  %v1361_v52 = vsel %vm506_vm2, %v1338_v7, 0  ;;  %v3255_v15 = vunpack.i.h.bf16 %v3253_v14  ;;  %v3254_v54 = vunpack.i.l.bf16 %v3253_v14  ;;  %v1358_v17 = vsel %vm506_vm2, %v1337_v51, 0 }
 0xb46   :  { %3062 = vmatpush3.bf16.xpose.msra.mxu1 %v1361_v52 }
 0xb47   :  { %3202 = vmatprep.subr.msk.bf16.mxu1 %vm506_vm2, %v1337_v51  ;;  %v1336_v59 = vpack.c.bf16 %v3255_v15, %v3254_v54 }
 0xb48   :  { %v4075_v31 = vpop.permute.xlu1 %1273  ;;  %v4085_v22 = vpop.permute.xlu0 %1281 }
 0xb49   :  { %v1355_v56 = vsel %vm506_vm2, %v1336_v59, 0  ;;  %v1332_v26 = vpack.c.bf16 %v4077_v61, %v4075_v31 }
 0xb4c   :  { %v4081_v21 = vpop.permute.xlu1 %1279  ;;  %v4093_v9 = vpop.permute.xlu0 %1287 }
 0xb4d   :  { %v1333_v27 = vpack.c.bf16 %v4085_v22, %v4081_v21 }
 0xb4e   :  { %3064 = vmatpush3.bf16.xpose.msra.mxu1 %v1358_v17 }
 0xb4f   :  { %3203 = vmatprep.subr.msk.bf16.mxu1 %vm506_vm2, %v1336_v59 }
 0xb50   :  { %v4091_v24 = vpop.permute.xlu1 %1285 }
 0xb51   :  { %v1334_v28 = vpack.c.bf16 %v4093_v9, %v4091_v24 }
 0xb56   :  { %3066 = vmatpush3.bf16.xpose.msra.mxu1 %v1355_v56 }
 0xb57   :  { %3204 = vmatprep.subr.msk.bf16.mxu1 %vm506_vm2, %v1335_v53 }
 0xb5e   :  { %3068 = vmatpush3.bf16.xpose.msra.mxu1 %v1352_v19 }
 0xb5f   :  { %3093 = vmatprep.subr.bf16.mxu1 %v3528_v0 }
 0xb65   :  { %3070 = vmatmul.mubr.msk.bf16.vlgmr.msra.gmra.mxu1 %vm506_vm2, %v1332_v26 }
 0xb66   :  { %3073 = vmatprep.mubr.msk.bf16.mxu1 %vm506_vm2, %v1333_v27 }
 0xb6d   :  { %3074 = vmatmul.mubr.msk.bf16.gmra.mxu1 %vm506_vm2, %v1334_v28 }
 0xb6e   :  { %3109 = vmatprep.mubr.msk.bf16.mxu1 %vm3529_vm0, %v3528_v0 }
 0xc25   :  { %v3071_v29 = vpop.f32.mrf.mxu1 }
 0xc26   :  { %v1430_v23 = vmul.f32 0.17677669, %v3071_v29 }
 0xc27   :  { %v1397_v13 = vpop.f32.mrf.mxu1 }
 0xc28   :  { %v1428_v34 = vmul.f32 0.17677669, %v1397_v13  ;;  %v1438_v35 = vadd.f32 %v1430_v23, %v3779_v1 }
 0xc29   :  { %v3072_v37 = vpop.f32.mrf.mxu1 }
 0xc2a   :  { %v1450_v38 = vsel %vm77_vm1, %v1438_v35, -inf  ;;  %v1436_v33 = vadd.f32 %v1428_v34, %v3784_v4  ;;  %v1431_v45 = vmul.f32 0.17677669, %v3072_v37 }
 0xc2b   :  { %1451 = vmax.xlane.f32.xlu0 %v1450_v38  ;;  %v1400_v46 = vpop.f32.mrf.mxu1 }
 0xc2c   :  { %v1429_v49 = vmul.f32 0.17677669, %v1400_v46  ;;  %v1444_v50 = vsel %vm77_vm1, %v1436_v33, -inf  ;;  %v1439_v53 = vadd.f32 %v1431_v45, %v3798_v18 }
 0xc2d   :  { %1445 = vmax.xlane.f32.xlu1 %v1444_v50  ;;  %v3075_v55 = vpop.f32.mrf.mxu1 }
 0xc2e   :  { %v1437_v57 = vadd.f32 %v1429_v49, %v3792_v11  ;;  %v1434_v62 = vmul.f32 0.17677669, %v3075_v55  ;;  %v1453_v3 = vsel %vm77_vm1, %v1439_v53, -inf }
 0xc2f   :  { %v1413_v47 = vpop.f32.mrf.mxu1 }
 0xc30   :  { %v1432_v1 = vmul.f32 0.17677669, %v1413_v47  ;;  %v1447_v48 = vsel %vm77_vm1, %v1437_v57, -inf  ;;  %v1442_v11 = vadd.f32 %v1434_v62, %v3811_v30 }
 0xc31   :  { %1448 = vmax.xlane.f32.xlu0 %v1447_v48  ;;  %v3076_v44 = vpop.f32.mrf.mxu1 }
 0xc32   :  { %v1440_v4 = vadd.f32 %v1432_v1, %v3805_v25  ;;  %v1435_v5 = vmul.f32 0.17677669, %v3076_v44  ;;  %v1462_v52 = vsel %vm77_vm1, %v1442_v11, -inf }
 0xc33   :  { %v1416_v2 = vpop.f32.mrf.mxu1 }
 0xc34   :  { %v1433_v7 = vmul.f32 0.17677669, %v1416_v2  ;;  %v1456_v51 = vsel %vm77_vm1, %v1440_v4, -inf  ;;  %v1443_v15 = vadd.f32 %v1435_v5, %v3825_v42 }
 0xc35   :  { %1454 = vmax.xlane.f32.xlu0 %v1453_v3  ;;  %1457 = vmax.xlane.f32.xlu1 %v1456_v51 }
 0xc36   :  { %v1441_v18 = vadd.f32 %v1433_v7, %v3818_v36  ;;  %v1465_v25 = vsel %vm77_vm1, %v1443_v15, -inf }
 0xc38   :  { %v1459_v14 = vsel %vm77_vm1, %v1441_v18, -inf }
 0xc39   :  { %1463 = vmax.xlane.f32.xlu1 %v1462_v52  ;;  %1460 = vmax.xlane.f32.xlu0 %v1459_v14 }
 0xc3d   :  { %1466 = vmax.xlane.f32.xlu0 %v1465_v25 }
 0xc4a   :  { %3257 = vrot.lane.b32.xlu1 %v4048_v39, %s3532_s0 }
 0xcb4   :  { %v1452_v54 = vpop.xlane.xlu0 %1451 }
 0xcb5   :  { %v1470_v30 = vsub.f32 %v1438_v35, %v1452_v54 }
 0xcb6   :  { %v1446_v59 = vpop.xlane.xlu1 %1445 }
 0xcb7   :  { %v1480_v17 = vmul.f32 1.442695, %v1470_v30  ;;  %v1468_v56 = vsub.f32 %v1436_v33, %v1446_v59 }
 0xcb9   :  { %3477 = vpow2.f32 %v1480_v17  ;;  %v1476_v36 = vmul.f32 1.442695, %v1468_v56 }
 0xcba   :  { %v1449_v19 = vpop.xlane.xlu0 %1448 }
 0xcbb   :  { %3479 = vpow2.f32 %v1476_v36  ;;  %v1469_v26 = vsub.f32 %v1437_v57, %v1449_v19 }
 0xcbd   :  { %v1478_v29 = vmul.f32 1.442695, %v1469_v26 }
 0xcbe   :  { %v1455_v27 = vpop.xlane.xlu0 %1454  ;;  %v1458_v42 = vpop.xlane.xlu1 %1457 }
 0xcbf   :  { %v1471_v28 = vsub.f32 %v1439_v53, %v1455_v27  ;;  %v1472_v13 = vsub.f32 %v1440_v4, %v1458_v42 }
 0xcc1   :  { %v1482_v23 = vmul.f32 1.442695, %v1471_v28  ;;  %v1484_v35 = vmul.f32 1.442695, %v1472_v13 }
 0xcc2   :  { %v1464_v34 = vpop.xlane.xlu1 %1463  ;;  %v1461_v37 = vpop.xlane.xlu0 %1460 }
 0xcc3   :  { %3481 = vpow2.f32 %v1482_v23  ;;  %v1474_v38 = vsub.f32 %v1442_v11, %v1464_v34  ;;  %v1473_v46 = vsub.f32 %v1441_v18, %v1461_v37 }
 0xcc4   :  { %3483 = vpow2.f32 %v1478_v29 }
 0xcc5   :  { %v1488_v45 = vmul.f32 1.442695, %v1474_v38  ;;  %v1486_v1 = vmul.f32 1.442695, %v1473_v46 }
 0xcc6   :  { %v4118_v33 = vpop.eup %3477  ;;  %v1467_v49 = vpop.xlane.xlu0 %1466 }
 0xcc7   :  { %v3258_v50 = vpop.permute.xlu1 %3257  ;;  %3485 = vpow2.f32 %v1488_v45  ;;  %v1475_v55 = vsub.f32 %v1443_v15, %v1467_v49  ;;  %v1498_v53 = vsel %vm77_vm1, %v4118_v33, 0.0 }
 0xcc8   :  { %v3260_v57 = vunpack.i.h.bf16 %v3258_v50  ;;  %v3259_v47 = vunpack.i.l.bf16 %v3258_v50  ;;  %v3480_v62 = vpop.eup %3479  ;;  %3487 = vpow2.f32 %v1484_v35  ;;  %1499 = vadd.xlane.f32.xlu1 %v1498_v53 }
 0xcc9   :  { %v1490_v48 = vmul.f32 1.442695, %v1475_v55  ;;  %v1492_v4 = vsel %vm77_vm1, %v3480_v62, 0.0 }
 0xcca   :  { %v1539_v44 = vpack.c.bf16 %v3260_v57, %v3259_v47 }
 0xccb   :  { %3489 = vpow2.f32 %v1490_v48 }
 0xccc   :  { %3077 = vmatprep.subr.bf16.mxu0 %v1539_v44  ;;  %3491 = vpow2.f32 %v1486_v1  ;;  %1493 = vadd.xlane.f32.xlu1 %v1492_v4 }
 0xccd   :  { %3078 = vmatpush3.bf16.msra.mxu0 %v1539_v44 }
 0xcd0   :  { %v3482_v2 = vpop.eup %3481 }
 0xcd1   :  { %v1501_v3 = vsel %vm77_vm1, %v3482_v2, 0.0  ;;  %v3484_v5 = vpop.eup %3483 }
 0xcd2   :  { %1502 = vadd.xlane.f32.xlu0 %v1501_v3  ;;  %v1495_v51 = vsel %vm77_vm1, %v3484_v5, 0.0 }
 0xcd4   :  { %v4124_v7 = vpop.eup %3485 }
 0xcd5   :  { %v1510_v11 = vsel %vm77_vm1, %v4124_v7, 0.0  ;;  %v3488_v18 = vpop.eup %3487 }
 0xcd6   :  { %1496 = vadd.xlane.f32.xlu0 %v1495_v51  ;;  %1511 = vadd.xlane.f32.xlu1 %v1510_v11  ;;  %v1504_v15 = vsel %vm77_vm1, %v3488_v18, 0.0 }
 0xcd8   :  { %v3490_v52 = vpop.eup %3489 }
 0xcd9   :  { %v1513_v14 = vsel %vm77_vm1, %v3490_v52, 0.0  ;;  %v3492_v25 = vpop.eup %3491 }
 0xcda   :  { %1514 = vadd.xlane.f32.xlu0 %v1513_v14  ;;  %1505 = vadd.xlane.f32.xlu1 %v1504_v15  ;;  %v1507_v54 = vsel %vm77_vm1, %v3492_v25, 0.0 }
 0xcde   :  { %1508 = vadd.xlane.f32.xlu0 %v1507_v54 }
 0xceb   :  { %3267 = vrot.lane.b32.xlu1 %v4048_v39, %s3533_s9 }
 0xcf4   :  { %3262 = vrot.lane.b32.xlu0 %v4048_v39, %s3531_s2 }
 0xd51   :  { %v1500_v30 = vpop.xlane.xlu1 %1499 }
 0xd55   :  { %v1494_v59 = vpop.xlane.xlu1 %1493 }
 0xd56   :  { %3493 = vrcp.f32 %v1494_v59 }
 0xd5b   :  { %v1503_v17 = vpop.xlane.xlu0 %1502 }
 0xd5f   :  { %v1497_v56 = vpop.xlane.xlu0 %1496  ;;  %v1512_v36 = vpop.xlane.xlu1 %1511 }
 0xd60   :  { %3495 = vrcp.f32 %v1497_v56 }
 0xd61   :  { %3497 = vrcp.f32 %v1503_v17 }
 0xd62   :  { %3499 = vrcp.f32 %v1500_v30 }
 0xd63   :  { %v1515_v19 = vpop.xlane.xlu0 %1514  ;;  %v1506_v26 = vpop.xlane.xlu1 %1505 }
 0xd64   :  { %v3494_v28 = vpop.eup %3493 }
 0xd65   :  { %v1524_v35 = vmul.f32 %v3494_v28, %v3480_v62 }
 0xd67   :  { %v1509_v27 = vpop.xlane.xlu0 %1508  ;;  %v3268_v42 = vpop.permute.xlu1 %3267 }
 0xd68   :  { %3501 = vrcp.f32 %v1509_v27  ;;  %v3270_v23 = vunpack.i.h.bf16 %v3268_v42  ;;  %v3269_v13 = vunpack.i.l.bf16 %v3268_v42 }
 0xd69   :  { %3503 = vrcp.f32 %v1506_v26 }
 0xd6a   :  { %3505 = vrcp.f32 %v1515_v19  ;;  %v1537_v46 = vpack.c.bf16 %v3270_v23, %v3269_v13 }
 0xd6b   :  { %v3263_v29 = vpop.permute.xlu0 %3262  ;;  %3507 = vrcp.f32 %v1512_v36 }
 0xd6c   :  { %v3265_v39 = vunpack.i.h.bf16 %v3263_v29  ;;  %v3264_v34 = vunpack.i.l.bf16 %v3263_v29 }
 0xd6d   :  { %v3496_v37 = vpop.eup %3495 }
 0xd6e   :  { %v1538_v38 = vpack.c.bf16 %v3265_v39, %v3264_v34  ;;  %v1525_v45 = vmul.f32 %v3496_v37, %v3484_v5  ;;  %v3498_v50 = vpop.eup %3497 }
 0xd6f   :  { %v3500_v55 = vpop.eup %3499  ;;  %v1527_v53 = vmul.f32 %v3498_v50, %v3482_v2  ;;  %v3379_v50 = vld [vmem:[%s4467_s4 + $0x68] sm:$0xff]  }
 0xd70   :  { %3079 = vmatprep.subr.bf16.mxu0 %v1538_v38  ;;  %v1532_v49 = vpack.c.bf16 %v1525_v45, %v1524_v35  ;;  %v1526_v62 = vmul.f32 %v3500_v55, %v4118_v33  ;;  %v3380_v55 = vld [vmem:[%s4467_s4 + $0x60] sm:$0xff]  }
 0xd71   :  { %3080 = vmatpush3.bf16.msra.mxu0 %v1538_v38 }
 0xd72   :  { %3081 = vmatprep.subr.bf16.mxu0 %v1537_v46  ;;  %3085 = vmatprep.mubr.msk.bf16.mxu0 %vm77_vm1, %v1532_v49  ;;  %v1533_v44 = vpack.c.bf16 %v1527_v53, %v1526_v62  ;;  %v3378_v49 = vld [vmem:[%s4467_s4 + $0x70] sm:$0xff]   ;;  %v3383_v53 = vld [vmem:[%s4467_s4 + $0x48] sm:$0xff]  }
 0xd75   :  { %v3502_v57 = vpop.eup %3501  ;;  %3082 = vmatpush3.bf16.msra.mxu0 %v1537_v46 }
 0xd76   :  { %v3504_v47 = vpop.eup %3503  ;;  %3083 = vmatprep.subr.bf16.mxu0 %v4050_v32  ;;  %v1529_v1 = vmul.f32 %v3502_v57, %v3492_v25  ;;  %v3381_v57 = vld [vmem:[%s4467_s4 + $0x58] sm:$0xff]  }
 0xd77   :  { %v1528_v48 = vmul.f32 %v3504_v47, %v3488_v18  ;;  %v3506_v4 = vpop.eup %3505  ;;  %v3382_v47 = vld [vmem:[%s4467_s4 + $0x50] sm:$0xff]  }
 0xd78   :  { %v3508_v5 = vpop.eup %3507  ;;  %v1531_v51 = vmul.f32 %v3506_v4, %v3490_v52 }
 0xd79   :  { %3084 = vmatpush3.bf16.msra.mxu0 %v4050_v32  ;;  %v1534_v3 = vpack.c.bf16 %v1529_v1, %v1528_v48  ;;  %v1530_v11 = vmul.f32 %v3508_v5, %v4124_v7  ;;  %v3384_v1 = vld [vmem:[%s4467_s4 + $0x40] sm:$0xff]  }
 0xd7b   :  { %v1535_v14 = vpack.c.bf16 %v1531_v51, %v1530_v11 }
 0xd7c   :  { %3086 = vmatmul.mubr.msk.bf16.vlgmr.msra.gmra.mxu0 %vm77_vm1, %v1533_v44 }
 0xd7d   :  { %3089 = vmatprep.mubr.msk.bf16.mxu0 %vm77_vm1, %v1534_v3 }
 0xd84   :  { %3090 = vmatmul.mubr.msk.bf16.gmra.mxu0 %vm77_vm1, %v1535_v14  ;;  %v1680_v14 = vrot.slane %v4034_v20, %v3916_v12 }
 0xd85   :  { %1988 = vmatprep.mubr.bf16.mxu0 %v3530_v40 }
 0xe3c   :  { %v3087_v33 = vpop.f32.mrf.mxu0 }
 0xe3d   :  { %v1619_v32 = vadd.f32 %v3087_v33, %v4075_v31 }
 0xe3e   :  { %v1586_v2 = vpop.f32.mrf.mxu0 }
 0xe3f   :  { %1627 = vrot.lane.b32.xlu1 %v1619_v32, %s3532_s0 }
 0xe40   :  { %v3088_v18 = vpop.f32.mrf.mxu0 }
 0xe41   :  { %v1620_v15 = vadd.f32 %v3088_v18, %v4077_v61  ;;  %v1686_v18 = vrot.slane %v4034_v20, %v3921_v63 }
 0xe42   :  { %v1589_v25 = vpop.f32.mrf.mxu0 }
 0xe43   :  { %1629 = vrot.lane.b32.xlu1 %v1620_v15, %s3532_s0 }
 0xe44   :  { %v3091_v52 = vpop.f32.mrf.mxu0 }
 0xe45   :  { %v1623_v17 = vadd.f32 %v3091_v52, %v4091_v24 }
 0xe46   :  { %v1602_v54 = vpop.f32.mrf.mxu0 }
 0xe47   :  { %v1621_v7 = vadd.f32 %v1602_v54, %v4081_v21  ;;  %v1617_v21 = vadd.f32 %v1586_v2, %v4042_v41  ;;  %v3377_v41 = vld [vmem:[%s4467_s4 + $0x78] sm:$0xff]  }
 0xe48   :  { %v3092_v30 = vpop.f32.mrf.mxu0  ;;  %3094 = vmatpush3.bf16.msra.mxu1 %v3377_v41  ;;  %v3402_v41 = vld [vmem:[%s4465_s3 + $0x1b4] ss:$12 sps:$4 sm:$0xff]  }
 0xe49   :  { %1635 = vrot.lane.b32.xlu0 %v1621_v7, %s3531_s2  ;;  %v1624_v61 = vadd.f32 %v3092_v30, %v4093_v9  ;;  %3095 = vmatprep.subr.bf16.mxu1 %v3528_v0  ;;  %v1693_v7 = vrot.slane %v4034_v20, %v3928_v8 }
 0xe4a   :  { %v1605_v59 = vpop.f32.mrf.mxu0 }
 0xe4b   :  { %v1622_v31 = vadd.f32 %v1605_v59, %v4085_v22  ;;  %v1618_v22 = vadd.f32 %v1589_v25, %v4044_v43 }
 0xe4c   :  { %3096 = vmatpush3.bf16.msra.mxu1 %v3378_v49  ;;  %v3409_v49 = vld [vmem:[%s4465_s3 + $0x230] ss:$12 sps:$4 sm:$0xff]  }
 0xe4d   :  { %1643 = vrot.lane.b32.xlu0 %v1623_v17, %s3533_s9  ;;  %1637 = vrot.lane.b32.xlu1 %v1622_v31, %s3531_s2 }
 0xe4e   :  { %3097 = vmatprep.subr.bf16.mxu1 %v3528_v0 }
 0xe50   :  { %3098 = vmatpush3.bf16.msra.mxu1 %v3379_v50 }
 0xe51   :  { %1645 = vrot.lane.b32.xlu1 %v1624_v61, %s3533_s9  ;;  %3099 = vmatprep.subr.bf16.mxu1 %v3528_v0 }
 0xe54   :  { %3100 = vmatpush3.bf16.msra.mxu1 %v3380_v55 }
 0xe55   :  { %3101 = vmatprep.subr.bf16.mxu1 %v3528_v0 }
 0xe58   :  { %3102 = vmatpush3.bf16.msra.mxu1 %v3381_v57 }
 0xe59   :  { %3103 = vmatprep.subr.bf16.mxu1 %v3528_v0 }
 0xe5c   :  { %3104 = vmatpush3.bf16.msra.mxu1 %v3382_v47 }
 0xe5d   :  { %3105 = vmatprep.subr.bf16.mxu1 %v3528_v0 }
 0xe60   :  { %3106 = vmatpush3.bf16.msra.mxu1 %v3383_v53 }
 0xe61   :  { %3107 = vmatprep.subr.bf16.mxu1 %v3528_v0 }
 0xe64   :  { %3108 = vmatpush3.bf16.msra.mxu1 %v3384_v1 }
 0xeb1   :  { %v1628_v56 = vpop.permute.xlu1 %1627 }
 0xeb2   :  { %v1649_v26 = vsel %vm506_vm2, %v1617_v21, %v1628_v56 }
 0xeb5   :  { %v1630_v36 = vpop.permute.xlu1 %1629 }
 0xeb6   :  { %v1650_v9 = vsel %vm506_vm2, %v1618_v22, %v1630_v36  ;;  %v3393_v22 = vld [vmem:[%s4465_s3 + $0x1fc] ss:$12 sps:$4 sm:$0xff]  }
 0xebb   :  { %v1636_v19 = vpop.permute.xlu0 %1635 }
 0xebc   :  { %v1651_v27 = vsel %vm77_vm1, %v1649_v26, %v1636_v19 }
 0xebf   :  { %v1644_v24 = vpop.permute.xlu0 %1643  ;;  %v1638_v42 = vpop.permute.xlu1 %1637 }
 0xec0   :  { %v1653_v28 = vsel %vm821_vm3, %v1651_v27, %v1644_v24  ;;  %v1652_v29 = vsel %vm77_vm1, %v1650_v9, %v1638_v42  ;;  %v3387_v27 = vld [vmem:[%s4465_s3 + $0x22c] ss:$12 sps:$4 sm:$0xff]   ;;  %v3390_v24 = vld [vmem:[%s4465_s3 + $0x214] ss:$12 sps:$4 sm:$0xff]   ;;  %v3388_v42 = vld [vmem:[%s4465_s3 + $0x210] ss:$12 sps:$4 sm:$0xff]  }
 0xec1   :  { %1655 = vadd.xlane.f32.xlu0 %v1653_v28  ;;  %1956 = vmatprep.subr.bf16.mxu0 %v3387_v27  ;;  %v3396_v9 = vld [vmem:[%s4465_s3 + $0x1e4] ss:$12 sps:$4 sm:$0xff]  }
 0xec2   :  { %2045 = vmatprep.subr.bf16.mxu1 %v3387_v27 }
 0xec3   :  { %v1646_v23 = vpop.permute.xlu1 %1645 }
 0xec4   :  { %v1654_v13 = vsel %vm821_vm3, %v1652_v29, %v1646_v23  ;;  %v3394_v29 = vld [vmem:[%s4465_s3 + $0x1e0] ss:$12 sps:$4 sm:$0xff]  }
 0xec5   :  { %1657 = vadd.xlane.f32.xlu1 %v1654_v13  ;;  %v3399_v23 = vld [vmem:[%s4465_s3 + $0x1cc] ss:$12 sps:$4 sm:$0xff]  }
 0xf4a   :  { %v1656_v39 = vpop.xlane.xlu0 %1655 }
 0xf4b   :  { %v1659_v43 = vmul.f32 0.0078125, %v1656_v39  ;;  %v3400_v39 = vld [vmem:[%s4465_s3 + $0x1b0] ss:$12 sps:$4 sm:$0xff]  }
 0xf4d   :  { %v1661_v34 = vsub.f32 %v1653_v28, %v1659_v43  ;;  %v3391_v28 = vld [vmem:[%s4465_s3 + $0x1f8] ss:$12 sps:$4 sm:$0xff]   ;;  %v3405_v43 = vld [vmem:[%s4465_s3 + $0x19c] ss:$12 sps:$4 sm:$0xff]  }
 0xf4e   :  { %v1658_v37 = vpop.xlane.xlu1 %1657 }
 0xf4f   :  { %v1660_v38 = vmul.f32 0.0078125, %v1658_v37  ;;  %v1663_v35 = vmul.f32 %v1661_v34, %v1661_v34  ;;  %v3408_v37 = vld [vmem:[%s4465_s3 + $0x184] ss:$12 sps:$4 sm:$0xff]  }
 0xf51   :  { %v1662_v45 = vsub.f32 %v1654_v13, %v1660_v38  ;;  %1665 = vadd.xlane.f32.xlu0 %v1663_v35  ;;  %v3397_v13 = vld [vmem:[%s4465_s3 + $0x1c8] ss:$12 sps:$4 sm:$0xff]   ;;  %v4257_v38 = vld [vmem:[%s4464_s5] sm:$0xff] }
 0xf52   :  { %v1824_v35 = vrot.slane %v4257_v38, %v3928_v8 }
 0xf53   :  { %v1664_v46 = vmul.f32 %v1662_v45, %v1662_v45 }
 0xf55   :  { %1667 = vadd.xlane.f32.xlu0 %v1664_v46  ;;  %v1875_v46 = vpack.c.bf16 %v1824_v35, %v1824_v35 }
 0xfda   :  { %v1666_v62 = vpop.xlane.xlu0 %1665 }
 0xfdb   :  { %v1669_v48 = vmul.f32 0.0078125, %v1666_v62 }
 0xfdd   :  { %v1671_v44 = vadd.f32 1e-05, %v1669_v48 }
 0xfde   :  { %v1668_v4 = vpop.xlane.xlu0 %1667 }
 0xfdf   :  { %3509 = vrsqrt.f32 %v1671_v44  ;;  %v1670_v3 = vmul.f32 0.0078125, %v1668_v4  ;;  %v3410_v44 = vld [vmem:[%s4465_s3 + $0x218] ss:$12 sps:$4 sm:$0xff]   ;;  %v3411_v4 = vld [vmem:[%s4465_s3 + $0x200] ss:$12 sps:$4 sm:$0xff]  }
 0xfe1   :  { %v1672_v5 = vadd.f32 1e-05, %v1670_v3  ;;  %v3412_v3 = vld [vmem:[%s4465_s3 + $0x1e8] ss:$12 sps:$4 sm:$0xff]  }
 0xfe3   :  { %3511 = vrsqrt.f32 %v1672_v5  ;;  %v3413_v5 = vld [vmem:[%s4465_s3 + $0x1d0] ss:$12 sps:$4 sm:$0xff]  }
 0xfec   :  { %v3510_v51 = vpop.eup %3509 }
 0xfed   :  { %v1675_v11 = vmul.f32 %v3510_v51, %v1661_v34  ;;  %v3403_v34 = vld [vmem:[%s4465_s3 + $0x198] ss:$12 sps:$4 sm:$0xff]  }
 0xfee   :  { %v3414_v51 = vld [vmem:[%s4465_s3 + $0x1b8] ss:$12 sps:$4 sm:$0xff]  }
 0xfef   :  { %v1681_v2 = vmul.f32 %v1680_v14, %v1675_v11  ;;  %v3415_v11 = vld [vmem:[%s4465_s3 + $0x1a0] ss:$12 sps:$4 sm:$0xff]  }
 0xff0   :  { %v3512_v33 = vpop.eup %3511 }
 0xff1   :  { %v1676_v32 = vmul.f32 %v3512_v33, %v1662_v45  ;;  %v1687_v25 = vadd.f32 %v1686_v18, %v1681_v2  ;;  %v3406_v45 = vld [vmem:[%s4465_s3 + $0x180] ss:$12 sps:$4 sm:$0xff]  }
 0xff3   :  { %v1682_v15 = vmul.f32 %v1680_v14, %v1676_v32  ;;  %v3416_v14 = vld [vmem:[%s4465_s3 + $0x188] ss:$12 sps:$4 sm:$0xff]  }
 0xff5   :  { %v1688_v52 = vadd.f32 %v1686_v18, %v1682_v15 }
 0xff7   :  { %v1689_v54 = vpack.c.bf16 %v1688_v52, %v1687_v25 }
 0xff9   :  { %3110 = vmatmul.mubr.bf16.vlgmr.msra.gmra.mxu1 %v1689_v54 }
 0xffa   :  { %2077 = vmatprep.mubr.bf16.mxu1 %v3530_v40  ;;  %v3385_v40 = vld [vmem:[%s4465_s3 + $0x228] ss:$12 sps:$4 sm:$0xff]  }
 0xffb   :  { %1957 = vmatpush1.bf16.msra.mxu0 %v3385_v40  ;;  %2046 = vmatpush1.bf16.msra.mxu1 %v3385_v40 }
 0xffc   :  { %1958 = vmatprep.subr.bf16.mxu0 %v3390_v24  ;;  %2047 = vmatprep.subr.bf16.mxu1 %v3390_v24  ;;  %v4313_v24 = vld [vmem:[%s4464_s5 + $0x18] sm:$0xff] }
 0xfff   :  { %1959 = vmatpush1.bf16.msra.mxu0 %v3388_v42  ;;  %2048 = vmatpush1.bf16.msra.mxu1 %v3388_v42 }
0x1000   :  { %1960 = vmatprep.subr.bf16.mxu0 %v3393_v22  ;;  %2049 = vmatprep.subr.bf16.mxu1 %v3393_v22 }
0x1003   :  { %1961 = vmatpush1.bf16.msra.mxu0 %v3391_v28  ;;  %2050 = vmatpush1.bf16.msra.mxu1 %v3391_v28  ;;  %v2130_v28 = vrot.slane %v4313_v24, %v3600_v10 }
0x1004   :  { %1962 = vmatprep.subr.bf16.mxu0 %v3396_v9  ;;  %2051 = vmatprep.subr.bf16.mxu1 %v3396_v9 }
0x1007   :  { %1963 = vmatpush1.bf16.msra.mxu0 %v3394_v29  ;;  %2052 = vmatpush1.bf16.msra.mxu1 %v3394_v29 }
0x1008   :  { %1964 = vmatprep.subr.bf16.mxu0 %v3399_v23  ;;  %2053 = vmatprep.subr.bf16.mxu1 %v3399_v23  ;;  %v2135_v23 = vrot.slane %v4313_v24, %v3698_v58 }
0x100b   :  { %1965 = vmatpush1.bf16.msra.mxu0 %v3397_v13  ;;  %2054 = vmatpush1.bf16.msra.mxu1 %v3397_v13 }
0x100c   :  { %1966 = vmatprep.subr.bf16.mxu0 %v3402_v41  ;;  %2055 = vmatprep.subr.bf16.mxu1 %v3402_v41 }
0x100f   :  { %1967 = vmatpush1.bf16.msra.mxu0 %v3400_v39  ;;  %2056 = vmatpush1.bf16.msra.mxu1 %v3400_v39 }
0x1010   :  { %1968 = vmatprep.subr.bf16.mxu0 %v3405_v43  ;;  %2057 = vmatprep.subr.bf16.mxu1 %v3405_v43 }
0x1013   :  { %1969 = vmatpush1.bf16.msra.mxu0 %v3403_v34  ;;  %2058 = vmatpush1.bf16.msra.mxu1 %v3403_v34 }
0x1014   :  { %1970 = vmatprep.subr.bf16.mxu0 %v3408_v37  ;;  %2059 = vmatprep.subr.bf16.mxu1 %v3408_v37 }
0x1017   :  { %1971 = vmatpush1.bf16.msra.mxu0 %v3406_v45  ;;  %2060 = vmatpush1.bf16.msra.mxu1 %v3406_v45 }
0x1018   :  { %3113 = vmatprep.subr.bf16.mxu0 %v3528_v0  ;;  %3133 = vmatprep.subr.bf16.mxu1 %v3528_v0 }
0x101a   :  { %1989 = vmatmul.mubr.bf16.vlgmr.msra.gmra.mxu0 %v1875_v46 }
0x101b   :  { %3114 = vmatpush3.bf16.msra.mxu0 %v3409_v49  ;;  %3129 = vmatprep.mubr.msk.bf16.mxu0 %vm3529_vm0, %v3528_v0 }
0x101c   :  { %3115 = vmatprep.subr.bf16.mxu0 %v3528_v0 }
0x101f   :  { %3116 = vmatpush3.bf16.msra.mxu0 %v3410_v44 }
0x1020   :  { %3117 = vmatprep.subr.bf16.mxu0 %v3528_v0 }
0x1023   :  { %3118 = vmatpush3.bf16.msra.mxu0 %v3411_v4 }
0x1024   :  { %3119 = vmatprep.subr.bf16.mxu0 %v3528_v0 }
0x1027   :  { %3120 = vmatpush3.bf16.msra.mxu0 %v3412_v3 }
0x1028   :  { %3121 = vmatprep.subr.bf16.mxu0 %v3528_v0 }
0x102b   :  { %3122 = vmatpush3.bf16.msra.mxu0 %v3413_v5 }
0x102c   :  { %3123 = vmatprep.subr.bf16.mxu0 %v3528_v0 }
0x102f   :  { %3124 = vmatpush3.bf16.msra.mxu0 %v3414_v51 }
0x1030   :  { %3125 = vmatprep.subr.bf16.mxu0 %v3528_v0 }
0x1033   :  { %3126 = vmatpush3.bf16.msra.mxu0 %v3415_v11 }
0x1034   :  { %3127 = vmatprep.subr.bf16.mxu0 %v3528_v0 }
0x1037   :  { %3128 = vmatpush3.bf16.msra.mxu0 %v3416_v14 }
0x1038   :  { %3145 = vmatprep.subr.bf16.mxu0 %v3528_v0 }
0x10b9   :  { %v1776_v30 = vpop.f32.mrf.mxu1 }
0x10ba   :  { %v1777_v59 = vadd.f32 %v1776_v30, %v1693_v7 }
0x10bb   :  { %v3111_v17 = vpop.f32.mrf.mxu1 }
0x10bc   :  { %v1783_v31 = vmax.f32 %v1777_v59, 0.0 }
0x10bd   :  { %v1779_v61 = vpop.f32.mrf.mxu1 }
0x10be   :  { %v1780_v56 = vadd.f32 %v1779_v61, %v1693_v7  ;;  %v4203_v36 = vadd.f32 %v1783_v31, %v1687_v25  ;;  %v1812_v31 = vrot.slane %v4034_v20, %v4020_v16 }
0x10bf   :  { %v3112_v19 = vpop.f32.mrf.mxu1 }
0x10c0   :  { %v1784_v21 = vmax.f32 %v1780_v56, 0.0  ;;  %1787 = vadd.xlane.f32.xlu0 %v4203_v36  ;;  %v1818_v19 = vrot.slane %v4034_v20, %v4026_v6  ;;  %v2141_v20 = vrot.slane %v4313_v24, %v3703_v60 }
0x10c2   :  { %v4206_v26 = vadd.f32 %v1784_v21, %v1688_v52 }
0x10c4   :  { %1789 = vadd.xlane.f32.xlu1 %v4206_v26 }
0x10da   :  { %v1990_v33 = vpop.f32.mrf.mxu0 }
0x10db   :  { %v2131_v34 = vadd.f32 %v2130_v28, %v1990_v33 }
0x10dc   :  { %v1992_v32 = vpop.f32.mrf.mxu0 }
0x10de   :  { %v1993_v2 = vpop.f32.mrf.mxu0 }
0x10e0   :  { %v1994_v18 = vpop.f32.mrf.mxu0 }
0x1149   :  { %v1788_v50 = vpop.xlane.xlu0 %1787 }
0x114a   :  { %v1791_v55 = vmul.f32 0.0078125, %v1788_v50  ;;  %v2149_v50 = vrot.slane %v2131_v34, 4 }
0x114c   :  { %v1793_v57 = vsub.f32 %v4203_v36, %v1791_v55  ;;  %v2145_v55 = vrot.slane %v2131_v34, 6 }
0x114d   :  { %v1790_v47 = vpop.xlane.xlu1 %1789 }
0x114e   :  { %v1792_v53 = vmul.f32 0.0078125, %v1790_v47  ;;  %v1795_v1 = vmul.f32 %v1793_v57, %v1793_v57 }
0x1150   :  { %v1794_v62 = vsub.f32 %v4206_v26, %v1792_v53  ;;  %1797 = vadd.xlane.f32.xlu0 %v1795_v1 }
0x1152   :  { %v1796_v48 = vmul.f32 %v1794_v62, %v1794_v62 }
0x1154   :  { %1799 = vadd.xlane.f32.xlu1 %v1796_v48 }
0x11d9   :  { %v1798_v15 = vpop.xlane.xlu0 %1797 }
0x11da   :  { %v1801_v25 = vmul.f32 0.0078125, %v1798_v15 }
0x11dc   :  { %v1803_v52 = vadd.f32 1e-05, %v1801_v25 }
0x11dd   :  { %v1800_v54 = vpop.xlane.xlu1 %1799 }
0x11de   :  { %3513 = vrsqrt.f32 %v1803_v52  ;;  %v1802_v7 = vmul.f32 0.0078125, %v1800_v54 }
0x11e0   :  { %v1804_v30 = vadd.f32 1e-05, %v1802_v7 }
0x11e2   :  { %3515 = vrsqrt.f32 %v1804_v30 }
0x11eb   :  { %v3514_v59 = vpop.eup %3513 }
0x11ec   :  { %v1807_v17 = vmul.f32 %v3514_v59, %v1793_v57  ;;  %v2153_v57 = vrot.slane %v2131_v34, 2 }
0x11ee   :  { %v1813_v36 = vmul.f32 %v1812_v31, %v1807_v17 }
0x11ef   :  { %v3516_v61 = vpop.eup %3515 }
0x11f0   :  { %v1808_v56 = vmul.f32 %v3516_v61, %v1794_v62  ;;  %v1819_v26 = vadd.f32 %v1818_v19, %v1813_v36 }
0x11f2   :  { %v1814_v21 = vmul.f32 %v1812_v31, %v1808_v56  ;;  %v37_v31 = vld [vmem:[%s4466_s1 + $0x40] sm:$0xff] }
0x11f4   :  { %v1820_v40 = vadd.f32 %v1818_v19, %v1814_v21 }
0x11f6   :  { %v1996_v27 = vpack.c.bf16 %v1820_v40, %v1819_v26 }
0x11f8   :  { %2078 = vmatmul.mubr.bf16.vlgmr.msra.gmra.mxu1 %v1996_v27  ;;  %3130 = vmatmul.mubr.bf16.vlgmr.msra.gmra.mxu0 %v1996_v27 }
0x11f9   :  { %3141 = vmatprep.mubr.msk.bf16.mxu1 %vm3529_vm0, %v3528_v0  ;;  %3153 = vmatprep.mubr.msk.bf16.mxu0 %vm3529_vm0, %v3528_v0 }
0x12b8   :  { %v2079_v42 = vpop.f32.mrf.mxu1  ;;  %v2120_v22 = vpop.f32.mrf.mxu0 }
0x12b9   :  { %v4321_v39 = vadd.f32 %v2141_v20, %v2120_v22 }
0x12ba   :  { %v2080_v9 = vpop.f32.mrf.mxu1  ;;  %v3131_v29 = vpop.f32.mrf.mxu0 }
0x12bb   :  { %v2136_v45 = vadd.f32 %v2135_v23, %v2080_v9 }
0x12bc   :  { %v2082_v13 = vpop.f32.mrf.mxu1  ;;  %v2123_v41 = vpop.f32.mrf.mxu0 }
0x12bd   :  { %v4323_v43 = vadd.f32 %v2141_v20, %v2123_v41 }
0x12be   :  { %v2083_v37 = vpop.f32.mrf.mxu1  ;;  %v3132_v35 = vpop.f32.mrf.mxu0 }
0x12bf   :  { %v2137_v46 = vadd.f32 %v2135_v23, %v2083_v37  ;;  %v4327_v60 = vpack.i.bf16 %v4323_v43, %v4321_v39  ;;  %v2277_v10 = vpack.c.bf16 %v4323_v43, %v4321_v39 }
0x12c1   :  { %v3276_v49 = vpack.i.bf16 %v2137_v46, %v2136_v45  ;;  %v2204_v58 = vpack.c.bf16 %v2137_v46, %v2136_v45 }
0x12c3   :  { %3277 = vrot.lane.b32.xlu1 %v3276_v49, %s3531_s2  ;;  %3272 = vrot.lane.b32.xlu0 %v3276_v49, %s3532_s0  ;;  %v2212_v54 = vsel %vm506_vm2, %v2204_v58, 0 }
0x12c7   :  { %3282 = vrot.lane.b32.xlu1 %v3276_v49, %s3533_s9  ;;  %2150 = vrot.lane.b32.xlu0 %v2149_v50, %s3531_s2 }
0x12cb   :  { %2146 = vrot.lane.b32.xlu1 %v2145_v55, %s3533_s9 }
0x12cf   :  { %2154 = vrot.lane.b32.xlu1 %v2153_v57, %s3532_s0 }
0x1335   :  { %v3273_v47 = vpop.permute.xlu0 %3272  ;;  %v3278_v62 = vpop.permute.xlu1 %3277 }
0x1336   :  { %v3275_v53 = vunpack.i.h.bf16 %v3273_v47  ;;  %v3274_v1 = vunpack.i.l.bf16 %v3273_v47  ;;  %v3280_v44 = vunpack.i.h.bf16 %v3278_v62  ;;  %v3279_v4 = vunpack.i.l.bf16 %v3278_v62 }
0x1338   :  { %v2207_v48 = vpack.c.bf16 %v3275_v53, %v3274_v1  ;;  %v2206_v5 = vpack.c.bf16 %v3280_v44, %v3279_v4 }
0x1339   :  { %v3283_v51 = vpop.permute.xlu1 %3282  ;;  %v2151_v25 = vpop.permute.xlu0 %2150 }
0x133a   :  { %v2221_v3 = vsel %vm506_vm2, %v2207_v48, 0  ;;  %v3285_v11 = vunpack.i.h.bf16 %v3283_v51  ;;  %v3284_v14 = vunpack.i.l.bf16 %v3283_v51  ;;  %v2218_v33 = vsel %vm506_vm2, %v2206_v5, 0 }
0x133b   :  { %3134 = vmatpush3.bf16.xpose.msra.mxu1 %v2221_v3 }
0x133c   :  { %3135 = vmatprep.subr.bf16.mxu1 %v3528_v0  ;;  %v2205_v32 = vpack.c.bf16 %v3285_v11, %v3284_v14  ;;  %v3417_v14 = vld [vmem:[%s4467_s4 + $0xb8] sm:$0xff]  }
0x133d   :  { %v2147_v18 = vpop.permute.xlu1 %2146 }
0x133e   :  { %v2215_v2 = vsel %vm506_vm2, %v2205_v32, 0  ;;  %v2158_v15 = vsel %vm2157_vm4, %v2131_v34, %v2147_v18 }
0x133f   :  { %v2160_v7 = vsel %vm2159_vm5, %v2158_v15, %v2151_v25 }
0x1341   :  { %v2155_v52 = vpop.permute.xlu1 %2154 }
0x1342   :  { %v2162_v30 = vsel %vm2161_vm6, %v2160_v7, %v2155_v52  ;;  %v3419_v52 = vld [vmem:[%s4467_s4 + $0xa8] sm:$0xff]   ;;  %v3421_v7 = vld [vmem:[%s4467_s4 + $0x98] sm:$0xff]  }
0x1343   :  { %3136 = vmatpush3.bf16.xpose.msra.mxu1 %v2218_v33  ;;  %v2203_v59 = vpack.c.bf16 %v2162_v30, %v2162_v30  ;;  %v3418_v33 = vld [vmem:[%s4467_s4 + $0xb0] sm:$0xff]  }
0x1344   :  { %3137 = vmatprep.subr.bf16.mxu1 %v3528_v0 }
0x134b   :  { %3138 = vmatpush3.bf16.xpose.msra.mxu1 %v2215_v2 }
0x134c   :  { %3139 = vmatprep.subr.bf16.mxu1 %v3528_v0 }
0x1353   :  { %3140 = vmatpush3.bf16.xpose.msra.mxu1 %v2212_v54  ;;  %v3420_v54 = vld [vmem:[%s4467_s4 + $0xa0] sm:$0xff]  }
0x1354   :  { %3177 = vmatprep.subr.bf16.mxu1 %v3528_v0 }
0x135a   :  { %3142 = vmatmul.mubr.msk.bf16.vlgmr.msra.gmra.mxu1 %vm506_vm2, %v2203_v59  ;;  %v3423_v59 = vld [vmem:[%s4467_s4 + $0x88] sm:$0xff]  }
0x135b   :  { %3193 = vmatprep.mubr.msk.bf16.mxu1 %vm3529_vm0, %v3528_v0 }
0x141a   :  { %v2257_v17 = vpop.f32.mrf.mxu1 }
0x141b   :  { %v2263_v61 = vmul.f32 0.17677669, %v2257_v17  ;;  %v3424_v17 = vld [vmem:[%s4467_s4 + $0x80] sm:$0xff]  }
0x141c   :  { %v3143_v56 = vpop.f32.mrf.mxu1 }
0x141d   :  { %v2264_v36 = vadd.f32 %v2263_v61, %v37_v31 }
0x141e   :  { %v2260_v19 = vpop.f32.mrf.mxu1 }
0x141f   :  { %v2265_v21 = vsel %vm77_vm1, %v2264_v36, -inf }
0x1420   :  { %2266 = vmax.xlane.f32.xlu0 %v2265_v21  ;;  %v3144_v26 = vpop.f32.mrf.mxu1 }
0x1421   :  { %v2362_v26 = vrot.slane %v4313_v24, %v3921_v63  ;;  %v3425_v63 = vld [vmem:[%s4467_s4 + $0xf8] sm:$0xff]  }
0x1422   :  { %3178 = vmatpush3.bf16.msra.mxu1 %v3425_v63 }
0x1423   :  { %3179 = vmatprep.subr.bf16.mxu1 %v3528_v0 }
0x1436   :  { %3287 = vrot.lane.b32.xlu0 %v4327_v60, %s3532_s0 }
0x143a   :  { %3297 = vrot.lane.b32.xlu0 %v4327_v60, %s3533_s9 }
0x14a9   :  { %v2267_v40 = vpop.xlane.xlu0 %2266 }
0x14aa   :  { %v2268_v27 = vsub.f32 %v2264_v36, %v2267_v40  ;;  %v2357_v36 = vrot.slane %v4313_v24, %v3916_v12 }
0x14ac   :  { %v2269_v42 = vmul.f32 1.442695, %v2268_v27 }
0x14ad   :  { %v3288_v22 = vpop.permute.xlu0 %3287 }
0x14ae   :  { %3517 = vpow2.f32 %v2269_v42  ;;  %v3290_v20 = vunpack.i.h.bf16 %v3288_v22  ;;  %v3289_v28 = vunpack.i.l.bf16 %v3288_v22  ;;  %v2368_v22 = vrot.slane %v4313_v24, %v3928_v8 }
0x14b0   :  { %v2280_v9 = vpack.c.bf16 %v3290_v20, %v3289_v28 }
0x14b1   :  { %v3298_v41 = vpop.permute.xlu0 %3297 }
0x14b2   :  { %3146 = vmatpush3.bf16.msra.mxu0 %v2280_v9  ;;  %v3300_v45 = vunpack.i.h.bf16 %v3298_v41  ;;  %v3299_v46 = vunpack.i.l.bf16 %v3298_v41 }
0x14b3   :  { %3147 = vmatprep.subr.bf16.mxu0 %v3528_v0 }
0x14b4   :  { %v2278_v58 = vpack.c.bf16 %v3300_v45, %v3299_v46 }
0x14bb   :  { %v3518_v29 = vpop.eup %3517 }
0x14bc   :  { %v2271_v23 = vsel %vm77_vm1, %v3518_v29, 0.0 }
0x14bd   :  { %2272 = vadd.xlane.f32.xlu1 %v2271_v23 }
0x14ce   :  { %3292 = vrot.lane.b32.xlu1 %v4327_v60, %s3531_s2 }
0x1546   :  { %v2273_v13 = vpop.xlane.xlu1 %2272 }
0x1547   :  { %3519 = vrcp.f32 %v2273_v13 }
0x154a   :  { %v3293_v34 = vpop.permute.xlu1 %3292 }
0x154b   :  { %v3295_v37 = vunpack.i.h.bf16 %v3293_v34  ;;  %v3294_v35 = vunpack.i.l.bf16 %v3293_v34 }
0x154d   :  { %v2279_v49 = vpack.c.bf16 %v3295_v37, %v3294_v35  ;;  %v3426_v37 = vld [vmem:[%s4467_s4 + $0xf0] sm:$0xff]  }
0x154e   :  { %3180 = vmatpush3.bf16.msra.mxu1 %v3426_v37 }
0x154f   :  { %3148 = vmatpush3.bf16.msra.mxu0 %v2279_v49  ;;  %3181 = vmatprep.subr.bf16.mxu1 %v3528_v0 }
0x1550   :  { %3149 = vmatprep.subr.bf16.mxu0 %v3528_v0 }
0x1553   :  { %3150 = vmatpush3.bf16.msra.mxu0 %v2278_v58  ;;  %v3427_v58 = vld [vmem:[%s4467_s4 + $0xe8] sm:$0xff]  }
0x1554   :  { %v3520_v50 = vpop.eup %3519  ;;  %3151 = vmatprep.subr.bf16.mxu0 %v3528_v0  ;;  %3182 = vmatpush3.bf16.msra.mxu1 %v3427_v58 }
0x1555   :  { %v2275_v55 = vmul.f32 %v3520_v50, %v3518_v29  ;;  %v3428_v50 = vld [vmem:[%s4467_s4 + $0xe0] sm:$0xff]   ;;  %3183 = vmatprep.subr.bf16.mxu1 %v3528_v0 }
0x1557   :  { %3152 = vmatpush3.bf16.msra.mxu0 %v2277_v10  ;;  %v2276_v60 = vpack.c.bf16 %v2275_v55, %v2275_v55  ;;  %v3429_v55 = vld [vmem:[%s4467_s4 + $0xd8] sm:$0xff]  }
0x1558   :  { %3157 = vmatprep.subr.bf16.mxu0 %v3528_v0  ;;  %3184 = vmatpush3.bf16.msra.mxu1 %v3428_v50 }
0x1559   :  { %3185 = vmatprep.subr.bf16.mxu1 %v3528_v0 }
0x155a   :  { %3154 = vmatmul.mubr.msk.bf16.vlgmr.msra.gmra.mxu0 %vm77_vm1, %v2276_v60  ;;  %v3430_v60 = vld [vmem:[%s4467_s4 + $0xd0] sm:$0xff]  }
0x155b   :  { %3173 = vmatprep.mubr.msk.bf16.mxu0 %vm3529_vm0, %v3528_v0  ;;  %3158 = vmatpush3.bf16.msra.mxu0 %v3417_v14 }
0x155c   :  { %3159 = vmatprep.subr.bf16.mxu0 %v3528_v0  ;;  %3186 = vmatpush3.bf16.msra.mxu1 %v3429_v55 }
0x155d   :  { %3187 = vmatprep.subr.bf16.mxu1 %v3528_v0 }
0x155f   :  { %3160 = vmatpush3.bf16.msra.mxu0 %v3418_v33 }
0x1560   :  { %3161 = vmatprep.subr.bf16.mxu0 %v3528_v0  ;;  %3188 = vmatpush3.bf16.msra.mxu1 %v3430_v60 }
0x1561   :  { %3189 = vmatprep.subr.bf16.mxu1 %v3528_v0 }
0x1563   :  { %3162 = vmatpush3.bf16.msra.mxu0 %v3419_v52 }
0x1564   :  { %3163 = vmatprep.subr.bf16.mxu0 %v3528_v0 }
0x1567   :  { %3164 = vmatpush3.bf16.msra.mxu0 %v3420_v54 }
0x1568   :  { %3165 = vmatprep.subr.bf16.mxu0 %v3528_v0 }
0x156b   :  { %3166 = vmatpush3.bf16.msra.mxu0 %v3421_v7 }
0x156c   :  { %3167 = vmatprep.subr.bf16.mxu0 %v3528_v0 }
0x161a   :  { %v2318_v57 = vpop.f32.mrf.mxu0 }
0x161b   :  { %v2324_v47 = vadd.f32 %v2318_v57, %v2162_v30  ;;  %v3422_v30 = vld [vmem:[%s4467_s4 + $0x90] sm:$0xff]   ;;  %v3431_v57 = vld [vmem:[%s4467_s4 + $0xc8] sm:$0xff]  }
0x161c   :  { %v3155_v53 = vpop.f32.mrf.mxu0  ;;  %3168 = vmatpush3.bf16.msra.mxu0 %v3422_v30  ;;  %3190 = vmatpush3.bf16.msra.mxu1 %v3431_v57 }
0x161d   :  { %v2330_v1 = vrot.slane %v2324_v47, 4  ;;  %v2326_v62 = vrot.slane %v2324_v47, 2  ;;  %v2334_v43 = vrot.slane %v2324_v47, 6  ;;  %3169 = vmatprep.subr.bf16.mxu0 %v3528_v0  ;;  %3191 = vmatprep.subr.bf16.mxu1 %v3528_v0 }
0x161e   :  { %v2321_v48 = vpop.f32.mrf.mxu0 }
0x161f   :  { %2331 = vrot.lane.b32.xlu0 %v2330_v1, %s3531_s2  ;;  %2327 = vrot.lane.b32.xlu1 %v2326_v62, %s3532_s0  ;;  %v2475_v48 = vrot.slane %v4313_v24, %v4020_v16 }
0x1620   :  { %v3156_v39 = vpop.f32.mrf.mxu0  ;;  %3170 = vmatpush3.bf16.msra.mxu0 %v3423_v59 }
0x1621   :  { %3171 = vmatprep.subr.bf16.mxu0 %v3528_v0  ;;  %v2503_v0 = vrot.slane %v4257_v38, %v3916_v12 }
0x1623   :  { %2335 = vrot.lane.b32.xlu1 %v2334_v43, %s3533_s9 }
0x1624   :  { %3172 = vmatpush3.bf16.msra.mxu0 %v3424_v17 }
0x1691   :  { %v2328_v10 = vpop.permute.xlu1 %2327  ;;  %v2332_v44 = vpop.permute.xlu0 %2331 }
0x1692   :  { %v2338_v4 = vsel %vm506_vm2, %v2324_v47, %v2328_v10  ;;  %v3432_v47 = vld [vmem:[%s4467_s4 + $0xc0] sm:$0xff]   ;;  %v2480_v10 = vrot.slane %v4313_v24, %v4026_v6 }
0x1693   :  { %v2339_v3 = vsel %vm77_vm1, %v2338_v4, %v2332_v44  ;;  %3192 = vmatpush3.bf16.msra.mxu1 %v3432_v47  ;;  %v28_v24 = vld [vmem:[%s4464_s5 + $0x20] sm:$0x3] }
0x1695   :  { %v2336_v5 = vpop.permute.xlu1 %2335 }
0x1696   :  { %v2340_v51 = vsel %vm821_vm3, %v2339_v3, %v2336_v5 }
0x1697   :  { %v2341_v11 = vsel %vm2157_vm4, %v2340_v51, 0.0 }
0x1698   :  { %2342 = vadd.xlane.f32.xlu0 %v2341_v11 }
0x1721   :  { %v2343_v32 = vpop.xlane.xlu0 %2342 }
0x1722   :  { %v2344_v2 = vmul.f32 0.0078125, %v2343_v32 }
0x1724   :  { %v2345_v18 = vsub.f32 %v2340_v51, %v2344_v2 }
0x1726   :  { %v2346_v15 = vmul.f32 %v2345_v18, %v2345_v18 }
0x1728   :  { %v2347_v25 = vsel %vm2157_vm4, %v2346_v15, 0.0 }
0x1729   :  { %2348 = vadd.xlane.f32.xlu1 %v2347_v25 }
0x17b2   :  { %v2349_v31 = vpop.xlane.xlu1 %2348 }
0x17b3   :  { %v2350_v61 = vmul.f32 0.0078125, %v2349_v31 }
0x17b5   :  { %v2351_v56 = vadd.f32 1e-05, %v2350_v61 }
0x17b7   :  { %3521 = vrsqrt.f32 %v2351_v56 }
0x17c4   :  { %v3522_v19 = vpop.eup %3521 }
0x17c5   :  { %v2353_v21 = vmul.f32 %v3522_v19, %v2345_v18 }
0x17c7   :  { %v2358_v40 = vmul.f32 %v2357_v36, %v2353_v21 }
0x17c9   :  { %v2363_v27 = vadd.f32 %v2362_v26, %v2358_v40 }
0x17cb   :  { %v2364_v42 = vpack.c.bf16 %v2363_v27, %v2363_v27 }
0x17cd   :  { %3174 = vmatmul.mubr.bf16.vlgmr.msra.gmra.mxu0 %v2364_v42 }
0x188d   :  { %v2451_v20 = vpop.f32.mrf.mxu0 }
0x188e   :  { %v2452_v28 = vadd.f32 %v2451_v20, %v2368_v22 }
0x188f   :  { %v3175_v9 = vpop.f32.mrf.mxu0 }
0x1890   :  { %v2457_v29 = vmax.f32 %v2452_v28, 0.0 }
0x1891   :  { %v2454_v23 = vpop.f32.mrf.mxu0 }
0x1892   :  { %v2458_v13 = vadd.f32 %v2457_v29, %v2363_v27 }
0x1893   :  { %v3176_v41 = vpop.f32.mrf.mxu0 }
0x1894   :  { %v2459_v34 = vsel %vm2157_vm4, %v2458_v13, 0.0 }
0x1895   :  { %2460 = vadd.xlane.f32.xlu0 %v2459_v34 }
0x191e   :  { %v2461_v8 = vpop.xlane.xlu0 %2460 }
0x191f   :  { %v2462_v35 = vmul.f32 0.0078125, %v2461_v8 }
0x1921   :  { %v2463_v45 = vsub.f32 %v2458_v13, %v2462_v35 }
0x1923   :  { %v2464_v46 = vmul.f32 %v2463_v45, %v2463_v45 }
0x1925   :  { %v2465_v49 = vsel %vm2157_vm4, %v2464_v46, 0.0 }
0x1926   :  { %2466 = vadd.xlane.f32.xlu0 %v2465_v49 }
0x19af   :  { %v2467_v53 = vpop.xlane.xlu0 %2466 }
0x19b0   :  { %v2468_v1 = vmul.f32 0.0078125, %v2467_v53 }
0x19b2   :  { %v2469_v62 = vadd.f32 1e-05, %v2468_v1 }
0x19b4   :  { %3523 = vrsqrt.f32 %v2469_v62 }
0x19c1   :  { %v3524_v39 = vpop.eup %3523 }
0x19c2   :  { %v2471_v43 = vmul.f32 %v3524_v39, %v2463_v45 }
0x19c4   :  { %v2476_v44 = vmul.f32 %v2475_v48, %v2471_v43 }
0x19c6   :  { %v2481_v4 = vadd.f32 %v2480_v10, %v2476_v44 }
0x19c8   :  { %v2482_v3 = vpack.c.bf16 %v2481_v4, %v2481_v4 }
0x19ca   :  { %3194 = vmatmul.mubr.bf16.vlgmr.msra.gmra.mxu1 %v2482_v3 }
0x1a8a   :  { %v2586_v5 = vpop.f32.mrf.mxu1 }
0x1a8b   :  { %v2587_v51 = vadd.f32 %v2586_v5, %v2503_v0 }
0x1a8c   :  { %v3195_v11 = vpop.f32.mrf.mxu1 }
0x1a8d   :  { %v2592_v14 = vmul.f32 %v2587_v51, %v2587_v51 }
0x1a8e   :  { %v2589_v33 = vpop.f32.mrf.mxu1 }
0x1a8f   :  { %v2593_v32 = vsel %vm2157_vm4, %v2592_v14, 0.0 }
0x1a90   :  { %2594 = vadd.xlane.f32.xlu0 %v2593_v32  ;;  %v3196_v16 = vpop.f32.mrf.mxu1 }
0x1b19   :  { %v2595_v2 = vpop.xlane.xlu0 %2594 }
0x1b1a   :  { %v2596_v18 = vmax.f32 %v2595_v2, 1e-24 }
0x1b1c   :  { %3525 = vrsqrt.f32 %v2596_v18 }
0x1b29   :  { %v3526_v6 = vpop.eup %3525 }
0x1b2a   :  { %v2598_v15 = vmul.f32 %v3526_v6, %v2587_v51 }
0x1b2c   :  { %v2599_v25 = vmul.f32 %v2598_v15, %v28_v24 }
0x1b2e   :  { %v2600_v12 = vsel %vm2157_vm4, %v2599_v25, 0.0 }
0x1b2f   :  { %2601 = vadd.xlane.f32.xlu1 %v2600_v12 }
0x1bb8   :  { %v2602_v38 = vpop.xlane.xlu1 %2601 }
0x1bb9   :  { %2603 = vst [vmem:[%s4468_s6] sm:$0x3] %v2602_v38 }

</bundles_post_ra>
